<compile_context>
chip_gen: v7x
topology: tpu7x:2x2x1
jax: 0.10.0
libtpu: 0.0.40
codegen_flags: <defaults>
</compile_context>

<pallas_src>
from functools import partial

import jax
import jax.numpy as jnp
from jax.experimental import pallas as pl
from jax.experimental.pallas import tpu as pltpu


def _round_up(x, m):
    return ((x + m - 1) // m) * m


def _vae_kernel(n_sens, latent_dim,
                x_ref, eps_ref,
                w1_ref, b1_ref, w2_ref, b2_ref,
                wml_ref, bml_ref,
                w4_ref, b4_ref, w5_ref, b5_ref, w6_ref, b6_ref,
                recon_ref, packed_ref):
    L = latent_dim
    f32 = jnp.float32
    bf16 = jnp.bfloat16

    # ---------------- encoder (bf16 MXU operands, f32 accumulate) ------------
    # x arrives in bf16 already (cast once in the wrapper -> half the HBM bytes)
    h1 = jnp.maximum(
        jnp.dot(x_ref[...], w1_ref[...], preferred_element_type=f32)
        + b1_ref[...], 0.0)
    h2 = jnp.maximum(
        jnp.dot(h1.astype(bf16), w2_ref[...], preferred_element_type=f32)
        + b2_ref[...], 0.0)

    # fused, lane-padded mean/logvar head.  Columns of wml/bml are
    #   [ mu | logvar | mu | logvar | 0 ... ]   (width = packed output width)
    # so ml already holds `mean` under the z lanes [2L, 3L); duplicated columns
    # of one matmul are bitwise identical, keeping z[:, sens_idx] == mean exact.
    ml = (jnp.dot(h2.astype(bf16), wml_ref[...], preferred_element_type=f32)
          + bml_ref[...])

    # ------------- reparameterize (training mode), lane-dense f32 ------------
    lane = jax.lax.broadcasted_iota(jnp.int32, ml.shape, 1)
    zone = (lane >= 2 * L) & (lane < 3 * L)          # lanes that hold the sample z
    local = lane - 2 * L                             # latent index within z lanes
    # logvar sits at both [L,2L) and [3L,4L); a single XLU roll by L lanes puts
    # it under the z lanes regardless of the rotate direction.
    logv_z = pltpu.roll(ml, shift=L, axis=1)
    std_z = jnp.exp(0.5 * jnp.where(zone, logv_z, 0.0))
    sampled = ml + std_z * eps_ref[...]              # eps pre-placed at lanes [2L,3L)
    # sens columns [0, n_sens) copy the mean, column n_sens stays exactly zero,
    # columns (n_sens, L) get mean + std * eps   (PyTorch training-mode indexing)
    z_lanes = jnp.where(zone & (local < n_sens), ml,
                        jnp.where(zone & (local > n_sens), sampled,
                                  jnp.zeros_like(ml)))
    packed = jnp.where(lane < 2 * L, ml, z_lanes)    # [mean | logvar | z | 0]
    packed_ref[...] = packed                         # one unmasked 128-lane store

    # ---------------- decoder ----------------
    # w4 is zero-padded to [OUT_W, H] with live rows at [2L, 3L): feeding the
    # packed block is exactly z @ w4 and avoids a K=16 operand / lane realign.
    d1 = jnp.maximum(
        jnp.dot(packed.astype(bf16), w4_ref[...], preferred_element_type=f32)
        + b4_ref[...], 0.0)
    d2 = jnp.maximum(
        jnp.dot(d1.astype(bf16), w5_ref[...], preferred_element_type=f32)
        + b5_ref[...], 0.0)
    logits = (jnp.dot(d2.astype(bf16), w6_ref[...], preferred_element_type=f32)
              + b6_ref[...])
    # sigmoid(x) == 0.5 * tanh(0.5 * x) + 0.5 : single EUP push per vreg.
    recon_ref[...] = (0.5 * jnp.tanh(0.5 * logits) + 0.5).astype(recon_ref.dtype)


def vae_forward(x, eps, params, *, n_sens, recon_dtype=jnp.float32):
    """x: [B, C, H, W] float32.  eps: [B, latent_dim] float32 (training noise).

    Set recon_dtype=jnp.bfloat16 to halve the dominant output's HBM traffic
    (note: sigmoid then saturates to exact 0/1 for very large |logits|).
    """
    B, C, Hi, Wi = x.shape
    d_in = C * Hi * Wi
    L = eps.shape[1]

    (w1, b1, w2, b2, wmu, bmu, wlv, blv, w4, b4, w5, b5, w6, b6) = params
    bf16 = jnp.bfloat16
    hidden = w2.shape[1]

    # packed latent output width: [mean | logvar | z | (spare) | pad]
    OUT_W = max(128, _round_up(4 * L, 128))

    # fused + lane-padded mean/logvar head: [H, OUT_W], cols [mu|logvar|mu|logvar|0]
    wml = jnp.zeros((hidden, OUT_W), jnp.float32)
    wml = wml.at[:, 0:L].set(wmu).at[:, L:2 * L].set(wlv)
    wml = wml.at[:, 2 * L:3 * L].set(wmu).at[:, 3 * L:4 * L].set(wlv)
    bml = jnp.zeros((1, OUT_W), jnp.float32)
    bml = bml.at[:, 0:L].set(bmu).at[:, L:2 * L].set(blv)
    bml = bml.at[:, 2 * L:3 * L].set(bmu).at[:, 3 * L:4 * L].set(blv)

    # decoder first layer, K zero-padded to OUT_W with live rows at [2L, 3L)
    w4p = jnp.zeros((OUT_W, hidden), jnp.float32).at[2 * L:3 * L, :].set(w4)

    weights = (w1.astype(bf16), b1, w2.astype(bf16), b2,
               wml.astype(bf16), bml,
               w4p.astype(bf16), b4, w5.astype(bf16), b5, w6.astype(bf16), b6)

    # batch tiling: multiples of 16 rows (bf16 sublane granule); ceil(B/2)
    # guarantees >= 2 "parallel" grid steps whenever B > 16 so v7x's two
    # TensorCores both get work; capped at 256 rows (~HBM roofline already).
    TB = min(256, _round_up(-(-B // 2), 16))
    B_pad = _round_up(B, TB)
    grid = (B_pad // TB,)

    # x in bf16 (half the HBM traffic; goes straight to the MXU in-kernel)
    x_flat = x.reshape(B, d_in).astype(bf16)
    # eps placed at lanes [2L, 3L) of the packed frame (kept f32)
    eps_p = jnp.pad(eps, ((0, B_pad - B), (2 * L, OUT_W - 3 * L)))
    if B_pad != B:
        x_flat = jnp.pad(x_flat, ((0, B_pad - B), (0, 0)))

    def row_spec(ncols):
        return pl.BlockSpec((TB, ncols), lambda i: (i, 0))

    def resident_spec(arr):
        # constant block index -> weight stays resident in VMEM across batch tiles
        return pl.BlockSpec(arr.shape, lambda i: (0, 0))

    grid_spec = pltpu.PrefetchScalarGridSpec(
        num_scalar_prefetch=0,
        grid=grid,
        in_specs=[row_spec(d_in), row_spec(OUT_W)]
                 + [resident_spec(w) for w in weights],
        out_specs=(row_spec(d_in), row_spec(OUT_W)),
    )

    out_shape = (
        jax.ShapeDtypeStruct((B_pad, d_in), recon_dtype),    # reconstruct (flat)
        jax.ShapeDtypeStruct((B_pad, OUT_W), jnp.float32),   # packed [mean|logvar|z]
    )

    # explicit VMEM budget: double-buffered row tiles + resident weights,
    # capped at 64 MiB so the same configuration stays v7x-safe.
    recon_isize = jnp.dtype(recon_dtype).itemsize
    weight_bytes = sum(int(w.size) * w.dtype.itemsize for w in weights)
    tile_bytes = TB * (d_in * 2 + OUT_W * 4 + d_in * recon_isize + OUT_W * 4)
    vmem_limit = int(min(max(2 * weight_bytes + 2 * tile_bytes + (4 << 20),
                             32 << 20), 64 << 20))

    mm_flops_per_row = (d_in * hidden + hidden * hidden + hidden * OUT_W
                        + OUT_W * hidden + hidden * hidden + hidden * d_in)
    cost = pl.CostEstimate(
        flops=int(2 * B_pad * mm_flops_per_row),
        transcendentals=int(B_pad * (OUT_W + d_in)),
        bytes_accessed=int(B_pad * (d_in * 2 + OUT_W * 4
                                    + d_in * recon_isize + OUT_W * 4)
                           + weight_bytes),
    )

    # NOTE: for very large d_in/hidden (e.g. 3x64x64 images with hidden >= 2048)
    # w1/w6 no longer fit whole in v7x's 64 MiB VMEM; that regime needs a
    # K-split of w1 / N-split of w6 over an extra "arbitrary" grid axis with an
    # f32 VMEM accumulator instead of the resident whole-weight specs used here.
    recon_flat, packed = pl.pallas_call(
        partial(_vae_kernel, n_sens, L),
        grid_spec=grid_spec,
        out_shape=out_shape,
        compiler_params=pltpu.CompilerParams(
            dimension_semantics=("parallel",),
            vmem_limit_bytes=vmem_limit),
        cost_estimate=cost,
    )(x_flat, eps_p, *weights)

    reconstruct = recon_flat[:B].reshape(B, C, Hi, Wi)
    mean = packed[:B, :L]
    logvar = packed[:B, L:2 * L]
    z = packed[:B, 2 * L:3 * L]
    return reconstruct, (mean, logvar), z


def init_params(key, d_in, hidden, latent_dim):
    """Deterministic Kaiming-style init (stands in for disvae weights_init)."""
    def lin(k, fan_in, fan_out):
        kw, _ = jax.random.split(k)
        w = jax.random.normal(kw, (fan_in, fan_out), jnp.float32) * jnp.sqrt(2.0 / fan_in)
        b = jnp.zeros((1, fan_out), jnp.float32)
        return w, b

    keys = jax.random.split(key, 7)
    w1, b1 = lin(keys[0], d_in, hidden)
    w2, b2 = lin(keys[1], hidden, hidden)
    wmu, bmu = lin(keys[2], hidden, latent_dim)
    wlv, blv = lin(keys[3], hidden, latent_dim)
    w4, b4 = lin(keys[4], latent_dim, hidden)
    w5, b5 = lin(keys[5], hidden, hidden)
    w6, b6 = lin(keys[6], hidden, d_in)
    return (w1, b1, w2, b2, wmu, bmu, wlv, blv, w4, b4, w5, b5, w6, b6)


if __name__ == "__main__":
    # small shapes consistent with the module: img_size = (4, 16, 16)
    B, C, Hi, Wi = 2, 4, 16, 16
    latent_dim = 16
    n_sens = 2
    hidden = 128
    d_in = C * Hi * Wi

    key = jax.random.PRNGKey(0)
    k_x, k_eps, k_p = jax.random.split(key, 3)

    x = jax.random.uniform(k_x, (B, C, Hi, Wi), jnp.float32)
    eps = jax.random.normal(k_eps, (B, latent_dim), jnp.float32)  # deterministic randn_like
    params = init_params(k_p, d_in, hidden, latent_dim)

    reconstruct, (mean, logvar), z = vae_forward(x, eps, params, n_sens=n_sens)
    jax.block_until_ready((reconstruct, mean, logvar, z))

    assert reconstruct.shape == (B, C, Hi, Wi)
    assert mean.shape == (B, latent_dim) and logvar.shape == (B, latent_dim)
    assert z.shape == (B, latent_dim)
    # column n_sens of the latent sample must be exactly zero (skipped index).
    assert bool(jnp.all(z[:, n_sens] == 0.0))
    # sens columns [0, n_sens) must equal the mean exactly.
    assert bool(jnp.all(z[:, :n_sens] == mean[:, :n_sens]))
    # outputs are in (0, 1) after sigmoid.
    assert bool(jnp.all((reconstruct > 0.0) & (reconstruct < 1.0)))

    print("KERNEL_OK")
</pallas_src>

<mosaic_0001>
module attributes {stable_mosaic.version = 11 : i64} {
  func.func @_vae_kernel(%arg0: i32, %arg1: memref<16x1024xbf16, #tpu.memory_space<vmem>>, %arg2: memref<16x128xf32, #tpu.memory_space<vmem>>, %arg3: memref<1024x128xbf16, #tpu.memory_space<vmem>>, %arg4: memref<1x128xf32, #tpu.memory_space<vmem>>, %arg5: memref<128x128xbf16, #tpu.memory_space<vmem>>, %arg6: memref<1x128xf32, #tpu.memory_space<vmem>>, %arg7: memref<128x128xbf16, #tpu.memory_space<vmem>>, %arg8: memref<1x128xf32, #tpu.memory_space<vmem>>, %arg9: memref<128x128xbf16, #tpu.memory_space<vmem>>, %arg10: memref<1x128xf32, #tpu.memory_space<vmem>>, %arg11: memref<128x128xbf16, #tpu.memory_space<vmem>>, %arg12: memref<1x128xf32, #tpu.memory_space<vmem>>, %arg13: memref<128x1024xbf16, #tpu.memory_space<vmem>>, %arg14: memref<1x1024xf32, #tpu.memory_space<vmem>>, %arg15: memref<16x1024xf32, #tpu.memory_space<vmem>>, %arg16: memref<16x128xf32, #tpu.memory_space<vmem>>) attributes {dimension_semantics = [#tpu.dimension_semantics<parallel>], iteration_bounds = array<i64: 1>, scalar_prefetch = 0 : i64, scratch_operands = 0 : i64, tpu.core_type = #tpu.core_type<tc>, window_params = [{transform_indices = @transform_0, window_bounds = array<i64: 16, 1024>}, {transform_indices = @transform_1, window_bounds = array<i64: 16, 128>}, {pipeline_mode = #tpu.pipeline_mode<synchronous>, transform_indices = @transform_2, window_bounds = array<i64: 1024, 128>}, {pipeline_mode = #tpu.pipeline_mode<synchronous>, transform_indices = @transform_3, window_bounds = array<i64: 1, 128>}, {pipeline_mode = #tpu.pipeline_mode<synchronous>, transform_indices = @transform_4, window_bounds = array<i64: 128, 128>}, {pipeline_mode = #tpu.pipeline_mode<synchronous>, transform_indices = @transform_5, window_bounds = array<i64: 1, 128>}, {pipeline_mode = #tpu.pipeline_mode<synchronous>, transform_indices = @transform_6, window_bounds = array<i64: 128, 128>}, {pipeline_mode = #tpu.pipeline_mode<synchronous>, transform_indices = @transform_7, window_bounds = array<i64: 1, 128>}, {pipeline_mode = #tpu.pipeline_mode<synchronous>, transform_indices = @transform_8, window_bounds = array<i64: 128, 128>}, {pipeline_mode = #tpu.pipeline_mode<synchronous>, transform_indices = @transform_9, window_bounds = array<i64: 1, 128>}, {pipeline_mode = #tpu.pipeline_mode<synchronous>, transform_indices = @transform_10, window_bounds = array<i64: 128, 128>}, {pipeline_mode = #tpu.pipeline_mode<synchronous>, transform_indices = @transform_11, window_bounds = array<i64: 1, 128>}, {pipeline_mode = #tpu.pipeline_mode<synchronous>, transform_indices = @transform_12, window_bounds = array<i64: 128, 1024>}, {pipeline_mode = #tpu.pipeline_mode<synchronous>, transform_indices = @transform_13, window_bounds = array<i64: 1, 1024>}, {transform_indices = @transform_14, window_bounds = array<i64: 16, 1024>}, {transform_indices = @transform_15, window_bounds = array<i64: 16, 128>}]} {
    %c0 = arith.constant 0 : index
    %c0_0 = arith.constant 0 : index
    %0 = vector.load %arg1[%c0, %c0_0] : memref<16x1024xbf16, #tpu.memory_space<vmem>>, vector<16x1024xbf16>
    %c0_1 = arith.constant 0 : index
    %c0_2 = arith.constant 0 : index
    %1 = vector.load %arg3[%c0_1, %c0_2] : memref<1024x128xbf16, #tpu.memory_space<vmem>>, vector<1024x128xbf16>
    %cst = arith.constant dense<0.000000e+00> : vector<16x128xf32>
    %2 = tpu.matmul %0, %1, %cst {dimension_numbers = #tpu.dot_dimension_numbers<[1], [0], [0], [1], [0, 0, 1, 1], [], []>} : vector<16x1024xbf16>, vector<1024x128xbf16>, vector<16x128xf32> -> vector<16x128xf32>
    %c0_3 = arith.constant 0 : index
    %c0_4 = arith.constant 0 : index
    %3 = vector.load %arg4[%c0_3, %c0_4] : memref<1x128xf32, #tpu.memory_space<vmem>>, vector<1x128xf32>
    %4 = vector.broadcast %3 : vector<1x128xf32> to vector<16x128xf32>
    %5 = arith.addf %2, %4 : vector<16x128xf32>
    %cst_5 = arith.constant 0.000000e+00 : f32
    %6 = vector.broadcast %cst_5 : f32 to vector<16x128xf32>
    %7 = arith.maximumf %5, %6 : vector<16x128xf32>
    %8 = arith.truncf %7 : vector<16x128xf32> to vector<16x128xbf16>
    %c0_6 = arith.constant 0 : index
    %c0_7 = arith.constant 0 : index
    %9 = vector.load %arg5[%c0_6, %c0_7] : memref<128x128xbf16, #tpu.memory_space<vmem>>, vector<128x128xbf16>
    %cst_8 = arith.constant dense<0.000000e+00> : vector<16x128xf32>
    %10 = tpu.matmul %8, %9, %cst_8 {dimension_numbers = #tpu.dot_dimension_numbers<[1], [0], [0], [1], [0, 0, 1, 1], [], []>} : vector<16x128xbf16>, vector<128x128xbf16>, vector<16x128xf32> -> vector<16x128xf32>
    %c0_9 = arith.constant 0 : index
    %c0_10 = arith.constant 0 : index
    %11 = vector.load %arg6[%c0_9, %c0_10] : memref<1x128xf32, #tpu.memory_space<vmem>>, vector<1x128xf32>
    %12 = vector.broadcast %11 : vector<1x128xf32> to vector<16x128xf32>
    %13 = arith.addf %10, %12 : vector<16x128xf32>
    %cst_11 = arith.constant 0.000000e+00 : f32
    %14 = vector.broadcast %cst_11 : f32 to vector<16x128xf32>
    %15 = arith.maximumf %13, %14 : vector<16x128xf32>
    %16 = arith.truncf %15 : vector<16x128xf32> to vector<16x128xbf16>
    %c0_12 = arith.constant 0 : index
    %c0_13 = arith.constant 0 : index
    %17 = vector.load %arg7[%c0_12, %c0_13] : memref<128x128xbf16, #tpu.memory_space<vmem>>, vector<128x128xbf16>
    %cst_14 = arith.constant dense<0.000000e+00> : vector<16x128xf32>
    %18 = tpu.matmul %16, %17, %cst_14 {dimension_numbers = #tpu.dot_dimension_numbers<[1], [0], [0], [1], [0, 0, 1, 1], [], []>} : vector<16x128xbf16>, vector<128x128xbf16>, vector<16x128xf32> -> vector<16x128xf32>
    %c0_15 = arith.constant 0 : index
    %c0_16 = arith.constant 0 : index
    %19 = vector.load %arg8[%c0_15, %c0_16] : memref<1x128xf32, #tpu.memory_space<vmem>>, vector<1x128xf32>
    %20 = vector.broadcast %19 : vector<1x128xf32> to vector<16x128xf32>
    %21 = arith.addf %18, %20 : vector<16x128xf32>
    %22 = tpu.iota {dimensions = array<i32: 1>} : vector<16x128xi32>
    %c32_i32 = arith.constant 32 : i32
    %23 = vector.broadcast %c32_i32 : i32 to vector<16x128xi32>
    %24 = arith.cmpi sge, %22, %23 : vector<16x128xi32>
    %c48_i32 = arith.constant 48 : i32
    %25 = vector.broadcast %c48_i32 : i32 to vector<16x128xi32>
    %26 = arith.cmpi slt, %22, %25 : vector<16x128xi32>
    %27 = arith.andi %24, %26 : vector<16x128xi1>
    %c32_i32_17 = arith.constant 32 : i32
    %28 = vector.broadcast %c32_i32_17 : i32 to vector<16x128xi32>
    %29 = arith.subi %22, %28 : vector<16x128xi32>
    %c16_i32 = arith.constant 16 : i32
    %30 = tpu.dynamic_rotate %21 by %c16_i32 dim 1 : vector<16x128xf32>, i32 -> vector<16x128xf32>
    %cst_18 = arith.constant 0.000000e+00 : f32
    %31 = vector.broadcast %cst_18 : f32 to vector<16x128xf32>
    %32 = arith.select %27, %30, %31 : vector<16x128xi1>, vector<16x128xf32>
    %cst_19 = arith.constant 5.000000e-01 : f32
    %33 = vector.broadcast %cst_19 : f32 to vector<16x128xf32>
    %34 = arith.mulf %33, %32 : vector<16x128xf32>
    %35 = math.exp %34 : vector<16x128xf32>
    %c0_20 = arith.constant 0 : index
    %c0_21 = arith.constant 0 : index
    %36 = vector.load %arg2[%c0_20, %c0_21] : memref<16x128xf32, #tpu.memory_space<vmem>>, vector<16x128xf32>
    %37 = arith.mulf %35, %36 : vector<16x128xf32>
    %38 = arith.addf %21, %37 : vector<16x128xf32>
    %c2_i32 = arith.constant 2 : i32
    %39 = vector.broadcast %c2_i32 : i32 to vector<16x128xi32>
    %40 = arith.cmpi slt, %29, %39 : vector<16x128xi32>
    %41 = arith.andi %27, %40 : vector<16x128xi1>
    %c2_i32_22 = arith.constant 2 : i32
    %42 = vector.broadcast %c2_i32_22 : i32 to vector<16x128xi32>
    %43 = arith.cmpi sgt, %29, %42 : vector<16x128xi32>
    %44 = arith.andi %27, %43 : vector<16x128xi1>
    %cst_23 = arith.constant 0.000000e+00 : f32
    %45 = vector.broadcast %cst_23 : f32 to vector<16x128xf32>
    %46 = arith.select %44, %38, %45 : vector<16x128xi1>, vector<16x128xf32>
    %47 = arith.select %41, %21, %46 : vector<16x128xi1>, vector<16x128xf32>
    %c32_i32_24 = arith.constant 32 : i32
    %48 = vector.broadcast %c32_i32_24 : i32 to vector<16x128xi32>
    %49 = arith.cmpi slt, %22, %48 : vector<16x128xi32>
    %50 = arith.select %49, %21, %47 : vector<16x128xi1>, vector<16x128xf32>
    %c0_25 = arith.constant 0 : index
    %c0_26 = arith.constant 0 : index
    %51 = vector.load %arg16[%c0_25, %c0_26] : memref<16x128xf32, #tpu.memory_space<vmem>>, vector<16x128xf32>
    tpu.vector_store %arg16[%c0_25, %c0_26], %50 {strides = array<i32>} : memref<16x128xf32, #tpu.memory_space<vmem>>, vector<16x128xf32>,
    %52 = arith.truncf %50 : vector<16x128xf32> to vector<16x128xbf16>
    %c0_27 = arith.constant 0 : index
    %c0_28 = arith.constant 0 : index
    %53 = vector.load %arg9[%c0_27, %c0_28] : memref<128x128xbf16, #tpu.memory_space<vmem>>, vector<128x128xbf16>
    %cst_29 = arith.constant dense<0.000000e+00> : vector<16x128xf32>
    %54 = tpu.matmul %52, %53, %cst_29 {dimension_numbers = #tpu.dot_dimension_numbers<[1], [0], [0], [1], [0, 0, 1, 1], [], []>} : vector<16x128xbf16>, vector<128x128xbf16>, vector<16x128xf32> -> vector<16x128xf32>
    %c0_30 = arith.constant 0 : index
    %c0_31 = arith.constant 0 : index
    %55 = vector.load %arg10[%c0_30, %c0_31] : memref<1x128xf32, #tpu.memory_space<vmem>>, vector<1x128xf32>
    %56 = vector.broadcast %55 : vector<1x128xf32> to vector<16x128xf32>
    %57 = arith.addf %54, %56 : vector<16x128xf32>
    %cst_32 = arith.constant 0.000000e+00 : f32
    %58 = vector.broadcast %cst_32 : f32 to vector<16x128xf32>
    %59 = arith.maximumf %57, %58 : vector<16x128xf32>
    %60 = arith.truncf %59 : vector<16x128xf32> to vector<16x128xbf16>
    %c0_33 = arith.constant 0 : index
    %c0_34 = arith.constant 0 : index
    %61 = vector.load %arg11[%c0_33, %c0_34] : memref<128x128xbf16, #tpu.memory_space<vmem>>, vector<128x128xbf16>
    %cst_35 = arith.constant dense<0.000000e+00> : vector<16x128xf32>
    %62 = tpu.matmul %60, %61, %cst_35 {dimension_numbers = #tpu.dot_dimension_numbers<[1], [0], [0], [1], [0, 0, 1, 1], [], []>} : vector<16x128xbf16>, vector<128x128xbf16>, vector<16x128xf32> -> vector<16x128xf32>
    %c0_36 = arith.constant 0 : index
    %c0_37 = arith.constant 0 : index
    %63 = vector.load %arg12[%c0_36, %c0_37] : memref<1x128xf32, #tpu.memory_space<vmem>>, vector<1x128xf32>
    %64 = vector.broadcast %63 : vector<1x128xf32> to vector<16x128xf32>
    %65 = arith.addf %62, %64 : vector<16x128xf32>
    %cst_38 = arith.constant 0.000000e+00 : f32
    %66 = vector.broadcast %cst_38 : f32 to vector<16x128xf32>
    %67 = arith.maximumf %65, %66 : vector<16x128xf32>
    %68 = arith.truncf %67 : vector<16x128xf32> to vector<16x128xbf16>
    %c0_39 = arith.constant 0 : index
    %c0_40 = arith.constant 0 : index
    %69 = vector.load %arg13[%c0_39, %c0_40] : memref<128x1024xbf16, #tpu.memory_space<vmem>>, vector<128x1024xbf16>
    %cst_41 = arith.constant dense<0.000000e+00> : vector<16x1024xf32>
    %70 = tpu.matmul %68, %69, %cst_41 {dimension_numbers = #tpu.dot_dimension_numbers<[1], [0], [0], [1], [0, 0, 1, 1], [], []>} : vector<16x128xbf16>, vector<128x1024xbf16>, vector<16x1024xf32> -> vector<16x1024xf32>
    %c0_42 = arith.constant 0 : index
    %c0_43 = arith.constant 0 : index
    %71 = vector.load %arg14[%c0_42, %c0_43] : memref<1x1024xf32, #tpu.memory_space<vmem>>, vector<1x1024xf32>
    %72 = vector.broadcast %71 : vector<1x1024xf32> to vector<16x1024xf32>
    %73 = arith.addf %70, %72 : vector<16x1024xf32>
    %cst_44 = arith.constant 5.000000e-01 : f32
    %74 = vector.broadcast %cst_44 : f32 to vector<16x1024xf32>
    %75 = arith.mulf %74, %73 : vector<16x1024xf32>
    %76 = math.tanh %75 : vector<16x1024xf32>
    %cst_45 = arith.constant 5.000000e-01 : f32
    %77 = vector.broadcast %cst_45 : f32 to vector<16x1024xf32>
    %78 = arith.mulf %77, %76 : vector<16x1024xf32>
    %cst_46 = arith.constant 5.000000e-01 : f32
    %79 = vector.broadcast %cst_46 : f32 to vector<16x1024xf32>
    %80 = arith.addf %78, %79 : vector<16x1024xf32>
    %c0_47 = arith.constant 0 : index
    %c0_48 = arith.constant 0 : index
    %81 = vector.load %arg15[%c0_47, %c0_48] : memref<16x1024xf32, #tpu.memory_space<vmem>>, vector<16x1024xf32>
    tpu.vector_store %arg15[%c0_47, %c0_48], %80 {strides = array<i32>} : memref<16x1024xf32, #tpu.memory_space<vmem>>, vector<16x1024xf32>,
    return
  }
  func.func @transform_0(%arg0: i32) -> (i32, i32) {
    %c0_i32 = arith.constant 0 : i32
    %c0_i32_0 = arith.constant 0 : i32
    return %arg0, %c0_i32 : i32, i32
  }
  func.func @transform_1(%arg0: i32) -> (i32, i32) {
    %c0_i32 = arith.constant 0 : i32
    %c0_i32_0 = arith.constant 0 : i32
    return %arg0, %c0_i32 : i32, i32
  }
  func.func @transform_2(%arg0: i32) -> (i32, i32) {
    %c0_i32 = arith.constant 0 : i32
    %c0_i32_0 = arith.constant 0 : i32
    %c0_i32_1 = arith.constant 0 : i32
    return %c0_i32, %c0_i32_0 : i32, i32
  }
  func.func @transform_3(%arg0: i32) -> (i32, i32) {
    %c0_i32 = arith.constant 0 : i32
    %c0_i32_0 = arith.constant 0 : i32
    %c0_i32_1 = arith.constant 0 : i32
    return %c0_i32, %c0_i32_0 : i32, i32
  }
  func.func @transform_4(%arg0: i32) -> (i32, i32) {
    %c0_i32 = arith.constant 0 : i32
    %c0_i32_0 = arith.constant 0 : i32
    %c0_i32_1 = arith.constant 0 : i32
    return %c0_i32, %c0_i32_0 : i32, i32
  }
  func.func @transform_5(%arg0: i32) -> (i32, i32) {
    %c0_i32 = arith.constant 0 : i32
    %c0_i32_0 = arith.constant 0 : i32
    %c0_i32_1 = arith.constant 0 : i32
    return %c0_i32, %c0_i32_0 : i32, i32
  }
  func.func @transform_6(%arg0: i32) -> (i32, i32) {
    %c0_i32 = arith.constant 0 : i32
    %c0_i32_0 = arith.constant 0 : i32
    %c0_i32_1 = arith.constant 0 : i32
    return %c0_i32, %c0_i32_0 : i32, i32
  }
  func.func @transform_7(%arg0: i32) -> (i32, i32) {
    %c0_i32 = arith.constant 0 : i32
    %c0_i32_0 = arith.constant 0 : i32
    %c0_i32_1 = arith.constant 0 : i32
    return %c0_i32, %c0_i32_0 : i32, i32
  }
  func.func @transform_8(%arg0: i32) -> (i32, i32) {
    %c0_i32 = arith.constant 0 : i32
    %c0_i32_0 = arith.constant 0 : i32
    %c0_i32_1 = arith.constant 0 : i32
    return %c0_i32, %c0_i32_0 : i32, i32
  }
  func.func @transform_9(%arg0: i32) -> (i32, i32) {
    %c0_i32 = arith.constant 0 : i32
    %c0_i32_0 = arith.constant 0 : i32
    %c0_i32_1 = arith.constant 0 : i32
    return %c0_i32, %c0_i32_0 : i32, i32
  }
  func.func @transform_10(%arg0: i32) -> (i32, i32) {
    %c0_i32 = arith.constant 0 : i32
    %c0_i32_0 = arith.constant 0 : i32
    %c0_i32_1 = arith.constant 0 : i32
    return %c0_i32, %c0_i32_0 : i32, i32
  }
  func.func @transform_11(%arg0: i32) -> (i32, i32) {
    %c0_i32 = arith.constant 0 : i32
    %c0_i32_0 = arith.constant 0 : i32
    %c0_i32_1 = arith.constant 0 : i32
    return %c0_i32, %c0_i32_0 : i32, i32
  }
  func.func @transform_12(%arg0: i32) -> (i32, i32) {
    %c0_i32 = arith.constant 0 : i32
    %c0_i32_0 = arith.constant 0 : i32
    %c0_i32_1 = arith.constant 0 : i32
    return %c0_i32, %c0_i32_0 : i32, i32
  }
  func.func @transform_13(%arg0: i32) -> (i32, i32) {
    %c0_i32 = arith.constant 0 : i32
    %c0_i32_0 = arith.constant 0 : i32
    %c0_i32_1 = arith.constant 0 : i32
    return %c0_i32, %c0_i32_0 : i32, i32
  }
  func.func @transform_14(%arg0: i32) -> (i32, i32) {
    %c0_i32 = arith.constant 0 : i32
    %c0_i32_0 = arith.constant 0 : i32
    return %arg0, %c0_i32 : i32, i32
  }
  func.func @transform_15(%arg0: i32) -> (i32, i32) {
    %c0_i32 = arith.constant 0 : i32
    %c0_i32_0 = arith.constant 0 : i32
    return %arg0, %c0_i32 : i32, i32
  }
}

</mosaic_0001>

<bundles_post_ra>
// kernel: tpu_custom_call.1
= control target key start
LH: loop header
LB: loop body
LE: loop exit
PB: predicated region body
PF: predicated region fallthrough
CT: control target
= control target key end

     0   :  { %s3243_s0 = inlined_call_operand.hbm [shape: bf16[16,1024], index: 0, kind: input, shape index: {}]   ;;  %s3244_s1 = inlined_call_operand.hbm [shape: f32[16,128], index: 1, kind: input, shape index: {}]   ;;  %s3245_s2 = inlined_call_operand.hbm [shape: bf16[1024,128], index: 2, kind: input, shape index: {}]   ;;  %s3246_s3 = inlined_call_operand.vmem [shape: f32[1,128], index: 3, kind: input, shape index: {}]   ;;  %s3247_s4 = inlined_call_operand.hbm [shape: bf16[128,128], index: 4, kind: input, shape index: {}]   ;;  %s3248_s5 = inlined_call_operand.vmem [shape: f32[1,128], index: 5, kind: input, shape index: {}]   ;;  %s3249_s6 = inlined_call_operand.hbm [shape: bf16[128,128], index: 6, kind: input, shape index: {}]   ;;  %s3250_s7 = inlined_call_operand.vmem [shape: f32[1,128], index: 7, kind: input, shape index: {}]   ;;  %s3251_s8 = inlined_call_operand.hbm [shape: bf16[128,128], index: 8, kind: input, shape index: {}]   ;;  %s3252_s9 = inlined_call_operand.vmem [shape: f32[1,128], index: 9, kind: input, shape index: {}]   ;;  %s3253_s10 = inlined_call_operand.hbm [shape: bf16[128,128], index: 10, kind: input, shape index: {}]   ;;  %s3254_s11 = inlined_call_operand.vmem [shape: f32[1,128], index: 11, kind: input, shape index: {}]   ;;  %s3255_s12 = inlined_call_operand.hbm [shape: bf16[128,1024], index: 12, kind: input, shape index: {}]   ;;  %s3256_s13 = inlined_call_operand.vmem [shape: f32[1,1024], index: 13, kind: input, shape index: {}]   ;;  %s3257_s14 = inlined_call_operand.hbm [shape: f32[16,1024], index: 14, kind: output, shape index: {0}]   ;;  %s3258_s15 = inlined_call_operand.hbm [shape: f32[16,128], index: 15, kind: output, shape index: {1}]  }
   0x1   :  { %3261 = sst [smem:[#allocation26_spill]] %s3257_s14 }
   0x2   :  { %21 = vsyncpa [#allocation3], 0 }
   0x3   :  { %22 = vsyncpa [#allocation6], 0 }
   0x4   :  { %23 = vsyncpa [#allocation9], 0 }
   0x5   :  { %24 = vsyncpa [#allocation12], 0 }
   0x6   :  { %25 = vsyncpa [#allocation15], 0 }
   0x7   :  { %26 = vsyncpa [#allocation4], 0 }
   0x8   :  { %27 = vsyncpa [#allocation18], 0  ;;  %s2870_s18 = smov [#allocation5]   ;;  %s2636_s22 = scalar_lea.hbm %s3244_s1, 256 }
   0x9   :  { %s45_s19 = sshll.u32 %s2870_s18, 4  ;;  %p2637_p0 = scmp.ne.s32.totalorder %s3244_s1, %s2636_s22  ;;  %s46_s19 = int_to_ptr.vmem [resolvable:$true] %s45_s19 }
   0xa   :  { %p2640_p1 = scmp.lt.u32.totalorder %s2636_s22, %s3244_s1 }
   0xc   :  { %p2642_p2 = pnand %p2640_p1, %p2637_p0 }
   0xe   :  { %2645 = shalt.err (!%p2642_p2)
}
   0xf   :  { %s2646_s27 = scalar_lea.vmem %s46_s19, 256  ;;  %p2651_p4 = scmp.lt.s32.totalorder %s46_s19, %s46_s19 }
  0x10   :  { %p2647_p3 = scmp.ne.s32.totalorder %s46_s19, %s2646_s27  ;;  %p2652_p5 = scmp.lt.s32.totalorder %s2646_s27, %s2646_s27 }
  0x12   :  { %p2653_p6 = por %p2652_p5, %p2651_p4 }
  0x14   :  { %p2654_p7 = pnand %p2653_p6, %p2647_p3 }
  0x16   :  { %2657 = shalt.err (!%p2654_p7)
}
  0x17   :  { %s3260_s28 = smov 128   ;;  %s2872_s29 = smov 8  }
  0x18   :  { %51 = dma.hbm_to_vmem [thread:$0]  %s3244_s1, 256, %s46_s19, [#allocation6], %s3260_s28, %s3260_s28, %s2872_s29  }
  0x19   :  { %s2873_s17 = smov [#allocation8]   ;;  %s2874_s20 = smov [#allocation11]  }
  0x1a   :  { %s71_s18 = sshll.u32 %s2873_s17, 4  ;;  %s99_s21 = sshll.u32 %s2874_s20, 4  ;;  %s72_s18 = int_to_ptr.vmem [resolvable:$true] %s71_s18  ;;  %s100_s21 = int_to_ptr.vmem [resolvable:$true] %s99_s21 }
  0x1b   :  { %s2658_s24 = scalar_lea.hbm %s3247_s4, 1024 }
  0x1c   :  { %p2659_p8 = scmp.ne.s32.totalorder %s3247_s4, %s2658_s24  ;;  %p2662_p9 = scmp.lt.u32.totalorder %s2658_s24, %s3247_s4 }
  0x1e   :  { %p2664_p10 = pnand %p2662_p9, %p2659_p8 }
  0x20   :  { %2667 = shalt.err (!%p2664_p10)
}
  0x21   :  { %s2668_s1 = scalar_lea.vmem %s72_s18, 1024  ;;  %p2673_p12 = scmp.lt.s32.totalorder %s72_s18, %s72_s18 }
  0x22   :  { %p2669_p11 = scmp.ne.s32.totalorder %s72_s18, %s2668_s1  ;;  %p2674_p13 = scmp.lt.s32.totalorder %s2668_s1, %s2668_s1 }
  0x24   :  { %p2675_p0 = por %p2674_p13, %p2673_p12 }
  0x26   :  { %p2676_p1 = pnand %p2675_p0, %p2669_p11 }
  0x28   :  { %2679 = shalt.err (!%p2676_p1)
}
  0x29   :  { %s2875_s19 = smov 64   ;;  %s2876_s30 = smov 4  }
  0x2a   :  { %77 = dma.hbm_to_vmem [thread:$0]  %s3247_s4, 1024, %s72_s18, [#allocation9], %s2875_s19, %s2875_s19, %s2876_s30  }
  0x2b   :  { %s2680_s22 = scalar_lea.hbm %s3251_s8, 1024 }
  0x2c   :  { %p2681_p2 = scmp.ne.s32.totalorder %s3251_s8, %s2680_s22  ;;  %p2684_p3 = scmp.lt.u32.totalorder %s2680_s22, %s3251_s8 }
  0x2e   :  { %p2686_p4 = pnand %p2684_p3, %p2681_p2 }
  0x30   :  { %2689 = shalt.err (!%p2686_p4)
}
  0x31   :  { %s2690_s27 = scalar_lea.vmem %s100_s21, 1024  ;;  %p2695_p6 = scmp.lt.s32.totalorder %s100_s21, %s100_s21 }
  0x32   :  { %p2691_p5 = scmp.ne.s32.totalorder %s100_s21, %s2690_s27  ;;  %p2696_p7 = scmp.lt.s32.totalorder %s2690_s27, %s2690_s27 }
  0x34   :  { %p2697_p8 = por %p2696_p7, %p2695_p6 }
  0x36   :  { %p2698_p9 = pnand %p2697_p8, %p2691_p5 }
  0x38   :  { %2701 = shalt.err (!%p2698_p9)
}
  0x39   :  { %105 = dma.hbm_to_vmem [thread:$0]  %s3251_s8, 1024, %s100_s21, [#allocation12], %s2875_s19, %s2875_s19, %s2876_s30  }
  0x3a   :  { %s2877_s1 = smov [#allocation2]   ;;  %s2702_s20 = scalar_lea.hbm %s3243_s0, 1024 }
  0x3b   :  { %s33_s16 = sshll.u32 %s2877_s1, 4  ;;  %p2703_p10 = scmp.ne.s32.totalorder %s3243_s0, %s2702_s20  ;;  %s34_s16 = int_to_ptr.vmem [resolvable:$true] %s33_s16 }
  0x3c   :  { %p2706_p11 = scmp.lt.u32.totalorder %s2702_s20, %s3243_s0 }
  0x3e   :  { %p2708_p12 = pnand %p2706_p11, %p2703_p10 }
  0x40   :  { %2711 = shalt.err (!%p2708_p12)
}
  0x41   :  { %s2712_s26 = scalar_lea.vmem %s34_s16, 1024  ;;  %p2717_p0 = scmp.lt.s32.totalorder %s34_s16, %s34_s16 }
  0x42   :  { %p2713_p13 = scmp.ne.s32.totalorder %s34_s16, %s2712_s26  ;;  %p2718_p1 = scmp.lt.s32.totalorder %s2712_s26, %s2712_s26 }
  0x44   :  { %p2719_p2 = por %p2718_p1, %p2717_p0 }
  0x46   :  { %p2720_p3 = pnand %p2719_p2, %p2713_p13 }
  0x48   :  { %2723 = shalt.err (!%p2720_p3)
}
  0x49   :  { %s2878_s8 = smov 512   ;;  %s2879_s21 = smov 32  }
  0x4a   :  { %39 = dma.hbm_to_vmem [thread:$0]  %s3243_s0, 1024, %s34_s16, [#allocation3], %s2878_s8, %s2878_s8, %s2879_s21  }
  0x4b   :  { %s2880_s18 = smov [#allocation7]   ;;  %s2881_s17 = smov [#allocation10]  }
  0x4c   :  { %s57_s1 = sshll.u32 %s2880_s18, 4  ;;  %s85_s14 = sshll.u32 %s2881_s17, 4  ;;  %s58_s1 = int_to_ptr.vmem [resolvable:$true] %s57_s1  ;;  %s3031_s14 = int_to_ptr.vmem [resolvable:$true] %s85_s14 }
  0x4d   :  { %s2724_s23 = scalar_lea.hbm %s3245_s2, 8192 }
  0x4e   :  { %p2725_p4 = scmp.ne.s32.totalorder %s3245_s2, %s2724_s23  ;;  %p2728_p5 = scmp.lt.u32.totalorder %s2724_s23, %s3245_s2 }
  0x50   :  { %p2730_p6 = pnand %p2728_p5, %p2725_p4 }
  0x52   :  { %2733 = shalt.err (!%p2730_p6)
}
  0x53   :  { %s2734_s0 = scalar_lea.vmem %s58_s1, 8192  ;;  %p2739_p8 = scmp.lt.s32.totalorder %s58_s1, %s58_s1 }
  0x54   :  { %p2735_p7 = scmp.ne.s32.totalorder %s58_s1, %s2734_s0  ;;  %p2740_p9 = scmp.lt.s32.totalorder %s2734_s0, %s2734_s0 }
  0x56   :  { %p2741_p10 = por %p2740_p9, %p2739_p8 }
  0x58   :  { %p2742_p11 = pnand %p2741_p10, %p2735_p7 }
  0x5a   :  { %2745 = shalt.err (!%p2742_p11)
}
  0x5b   :  { %63 = dma.hbm_to_vmem [thread:$0]  %s3245_s2, 8192, %s58_s1, [#allocation6], %s2875_s19, %s2875_s19, %s2876_s30  }
  0x5c   :  { %s2746_s28 = scalar_lea.hbm %s3249_s6, 1024 }
  0x5d   :  { %p2747_p12 = scmp.ne.s32.totalorder %s3249_s6, %s2746_s28  ;;  %p2750_p13 = scmp.lt.u32.totalorder %s2746_s28, %s3249_s6 }
  0x5f   :  { %p2752_p0 = pnand %p2750_p13, %p2747_p12 }
  0x61   :  { %2755 = shalt.err (!%p2752_p0)
}
  0x62   :  { %s2756_s24 = scalar_lea.vmem %s3031_s14, 1024  ;;  %p2761_p2 = scmp.lt.s32.totalorder %s3031_s14, %s3031_s14 }
  0x63   :  { %p2757_p1 = scmp.ne.s32.totalorder %s3031_s14, %s2756_s24  ;;  %p2762_p3 = scmp.lt.s32.totalorder %s2756_s24, %s2756_s24 }
  0x65   :  { %p2763_p4 = por %p2762_p3, %p2761_p2 }
  0x67   :  { %p2764_p5 = pnand %p2763_p4, %p2757_p1 }
  0x69   :  { %2767 = shalt.err (!%p2764_p5)
}
  0x6a   :  { %91 = dma.hbm_to_vmem [thread:$0]  %s3249_s6, 1024, %s3031_s14, [#allocation9], %s2875_s19, %s2875_s19, %s2876_s30  }
  0x6b   :  { %s2882_s25 = smov [#allocation13]   ;;  %s2883_s0 = smov [#allocation14]  }
  0x6c   :  { %s113_s26 = sshll.u32 %s2882_s25, 4  ;;  %s127_s16 = sshll.u32 %s2883_s0, 4  ;;  %s114_s26 = int_to_ptr.vmem [resolvable:$true] %s113_s26  ;;  %s3068_s16 = int_to_ptr.vmem [resolvable:$true] %s127_s16 }
  0x6d   :  { %s2768_s18 = scalar_lea.hbm %s3253_s10, 1024 }
  0x6e   :  { %p2769_p6 = scmp.ne.s32.totalorder %s3253_s10, %s2768_s18  ;;  %p2772_p7 = scmp.lt.u32.totalorder %s2768_s18, %s3253_s10 }
  0x70   :  { %p2774_p8 = pnand %p2772_p7, %p2769_p6 }
  0x72   :  { %2777 = shalt.err (!%p2774_p8)
}
  0x73   :  { %s2778_s6 = scalar_lea.vmem %s114_s26, 1024  ;;  %p2783_p10 = scmp.lt.s32.totalorder %s114_s26, %s114_s26 }
  0x74   :  { %p2779_p9 = scmp.ne.s32.totalorder %s114_s26, %s2778_s6  ;;  %p2784_p11 = scmp.lt.s32.totalorder %s2778_s6, %s2778_s6 }
  0x76   :  { %p2785_p12 = por %p2784_p11, %p2783_p10 }
  0x78   :  { %p2786_p13 = pnand %p2785_p12, %p2779_p9 }
  0x7a   :  { %2789 = shalt.err (!%p2786_p13)
}
  0x7b   :  { %119 = dma.hbm_to_vmem [thread:$0]  %s3253_s10, 1024, %s114_s26, [#allocation12], %s2875_s19, %s2875_s19, %s2876_s30  }
  0x7c   :  { %s2790_s1 = scalar_lea.hbm %s3255_s12, 8192 }
  0x7d   :  { %p2791_p0 = scmp.ne.s32.totalorder %s3255_s12, %s2790_s1  ;;  %p2794_p1 = scmp.lt.u32.totalorder %s2790_s1, %s3255_s12 }
  0x7f   :  { %p2796_p2 = pnand %p2794_p1, %p2791_p0 }
  0x81   :  { %2799 = shalt.err (!%p2796_p2)
}
  0x82   :  { %s2800_s18 = scalar_lea.vmem %s3068_s16, 8192  ;;  %p2805_p4 = scmp.lt.s32.totalorder %s3068_s16, %s3068_s16 }
  0x83   :  { %p2801_p3 = scmp.ne.s32.totalorder %s3068_s16, %s2800_s18  ;;  %p2806_p5 = scmp.lt.s32.totalorder %s2800_s18, %s2800_s18 }
  0x85   :  { %p2807_p6 = por %p2806_p5, %p2805_p4 }
  0x87   :  { %p2808_p7 = pnand %p2807_p6, %p2801_p3 }
  0x89   :  { %2811 = shalt.err (!%p2808_p7)
}
  0x8a   :  { %133 = dma.hbm_to_vmem [thread:$0]  %s3255_s12, 8192, %s3068_s16, [#allocation15], %s2878_s8, %s2878_s8, %s2879_s21  }
  0x8b   :  { %2856 = dma.done.wait [#allocation3], 1024  }
  0x8c   :  { %2857 = vsyncadd [#allocation3], 4294966272 }
  0x8d   :  { %2858 = dma.done.wait [#allocation6], 8448  }
  0x8e   :  { %2859 = vsyncadd [#allocation6], 4294958848 }
  0x8f   :  { %2860 = dma.done.wait [#allocation9], 2048  }
  0x90   :  { %2861 = vsyncadd [#allocation9], 4294965248 }
  0x91   :  { %2862 = dma.done.wait [#allocation12], 2048  }
  0x92   :  { %2863 = vsyncadd [#allocation12], 4294965248 }
  0x93   :  { %2864 = dma.done.wait [#allocation15], 8192  }
  0x94   :  { %2865 = vsyncadd [#allocation15], 4294959104  ;;  %v2504_v0 = vld [vmem:[#allocation7 + $0x40] sm:$0xff]   ;;  %v2508_v4 = vld [vmem:[#allocation7 + $0x48] sm:$0xff]   ;;  %vm2885_vm0 = vmmov 0   ;;  %s2886_s16 = smov 16  }
  0x95   :  { %v2505_v1 = vld [vmem:[#allocation7 + $0xc0] sm:$0xff]   ;;  %2279 = vmatprep.subr.bf16.mxu0 %v2504_v0  ;;  %v2509_v5 = vld [vmem:[#allocation7 + $0xc8] sm:$0xff]   ;;  %v2512_v8 = vld [vmem:[#allocation7 + $0x50] sm:$0xff]  }
  0x96   :  { %v2506_v2 = vld [vmem:[#allocation7] sm:$0xff]   ;;  %2301 = vmatprep.subr.bf16.mxu1 %v2505_v1  ;;  %v2510_v6 = vld [vmem:[#allocation7 + $0x8] sm:$0xff]   ;;  %v2513_v9 = vld [vmem:[#allocation7 + $0xd0] sm:$0xff]  }
  0x97   :  { %v2507_v3 = vld [vmem:[#allocation7 + $0x80] sm:$0xff]   ;;  %2280 = vmatpush3.bf16.msra.mxu0 %v2506_v2  ;;  %v2511_v7 = vld [vmem:[#allocation7 + $0x88] sm:$0xff]   ;;  %v2514_v10 = vld [vmem:[#allocation7 + $0x10] sm:$0xff]  }
  0x98   :  { %2302 = vmatpush3.bf16.msra.mxu1 %v2507_v3  ;;  %2281 = vmatprep.subr.bf16.mxu0 %v2508_v4  ;;  %v2515_v11 = vld [vmem:[#allocation7 + $0x90] sm:$0xff]   ;;  %v2516_v12 = vld [vmem:[#allocation7 + $0x58] sm:$0xff]   ;;  %v2520_v16 = vld [vmem:[#allocation7 + $0x60] sm:$0xff]  }
  0x99   :  { %2303 = vmatprep.subr.bf16.mxu1 %v2509_v5  ;;  %v2517_v13 = vld [vmem:[#allocation7 + $0xd8] sm:$0xff]   ;;  %v2521_v17 = vld [vmem:[#allocation7 + $0xe0] sm:$0xff]   ;;  %v2524_v20 = vld [vmem:[#allocation7 + $0x68] sm:$0xff]  }
  0x9a   :  { %v2518_v14 = vld [vmem:[#allocation7 + $0x18] sm:$0xff]   ;;  %v2522_v18 = vld [vmem:[#allocation7 + $0x20] sm:$0xff]   ;;  %v2525_v21 = vld [vmem:[#allocation7 + $0xe8] sm:$0xff]  }
  0x9b   :  { %2282 = vmatpush3.bf16.msra.mxu0 %v2510_v6  ;;  %v2519_v15 = vld [vmem:[#allocation7 + $0x98] sm:$0xff]   ;;  %v2523_v19 = vld [vmem:[#allocation7 + $0xa0] sm:$0xff]   ;;  %v2526_v22 = vld [vmem:[#allocation7 + $0x28] sm:$0xff]  }
  0x9c   :  { %2304 = vmatpush3.bf16.msra.mxu1 %v2511_v7  ;;  %2283 = vmatprep.subr.bf16.mxu0 %v2512_v8  ;;  %v2527_v23 = vld [vmem:[#allocation7 + $0xa8] sm:$0xff]   ;;  %v2528_v24 = vld [vmem:[#allocation7 + $0x70] sm:$0xff]   ;;  %v2532_v28 = vld [vmem:[#allocation7 + $0x78] sm:$0xff]  }
  0x9d   :  { %2305 = vmatprep.subr.bf16.mxu1 %v2513_v9  ;;  %v2529_v25 = vld [vmem:[#allocation7 + $0xf0] sm:$0xff]   ;;  %v2533_v29 = vld [vmem:[#allocation7 + $0xf8] sm:$0xff]   ;;  %v2536_v40 = vld [vmem:[#allocation7 + $0x140] sm:$0xff]  }
  0x9e   :  { %v2530_v26 = vld [vmem:[#allocation7 + $0x30] sm:$0xff]   ;;  %v2534_v30 = vld [vmem:[#allocation7 + $0x38] sm:$0xff]   ;;  %v2537_v41 = vld [vmem:[#allocation7 + $0x1c0] sm:$0xff]  }
  0x9f   :  { %2284 = vmatpush3.bf16.msra.mxu0 %v2514_v10  ;;  %v2531_v27 = vld [vmem:[#allocation7 + $0xb0] sm:$0xff]   ;;  %v2535_v31 = vld [vmem:[#allocation7 + $0xb8] sm:$0xff]   ;;  %v2538_v42 = vld [vmem:[#allocation7 + $0x100] sm:$0xff]  }
  0xa0   :  { %2306 = vmatpush3.bf16.msra.mxu1 %v2515_v11  ;;  %2285 = vmatprep.subr.bf16.mxu0 %v2516_v12  ;;  %v161_v32 = vld [vmem:[#allocation2] sm:$0xff]  ;;  %v162_v34 = vld [vmem:[#allocation2 + $0x8] sm:$0xff]  ;;  %v2539_v43 = vld [vmem:[#allocation7 + $0x180] sm:$0xff]  }
  0xa1   :  { %2307 = vmatprep.subr.bf16.mxu1 %v2517_v13  ;;  %v165_v33 = vld [vmem:[#allocation2 + $0x20] sm:$0xff]  ;;  %v166_v37 = vld [vmem:[#allocation2 + $0x28] sm:$0xff]  ;;  %v2540_v44 = vld [vmem:[#allocation7 + $0x148] sm:$0xff]  }
  0xa2   :  { %v2106_v35 = vcombine.low %v161_v32, %v165_v33  ;;  %v2107_v36 = vcombine.high %v161_v32, %v165_v33  ;;  %v2108_v38 = vcombine.low %v162_v34, %v166_v37  ;;  %v2109_v39 = vcombine.high %v162_v34, %v166_v37  ;;  %v2541_v45 = vld [vmem:[#allocation7 + $0x1c8] sm:$0xff]   ;;  %v2544_v48 = vld [vmem:[#allocation7 + $0x150] sm:$0xff]   ;;  %v2548_v52 = vld [vmem:[#allocation7 + $0x158] sm:$0xff]  }
  0xa3   :  { %2286 = vmatpush3.bf16.msra.mxu0 %v2518_v14  ;;  %v2542_v46 = vld [vmem:[#allocation7 + $0x108] sm:$0xff]   ;;  %v2545_v49 = vld [vmem:[#allocation7 + $0x1d0] sm:$0xff]   ;;  %v2549_v53 = vld [vmem:[#allocation7 + $0x1d8] sm:$0xff]  }
  0xa4   :  { %2308 = vmatpush3.bf16.msra.mxu1 %v2519_v15  ;;  %2287 = vmatprep.subr.bf16.mxu0 %v2520_v16  ;;  %v2543_v47 = vld [vmem:[#allocation7 + $0x188] sm:$0xff]   ;;  %v2546_v50 = vld [vmem:[#allocation7 + $0x110] sm:$0xff]   ;;  %v2550_v54 = vld [vmem:[#allocation7 + $0x118] sm:$0xff]  }
  0xa5   :  { %2309 = vmatprep.subr.bf16.mxu1 %v2521_v17  ;;  %760 = vmatprep.mubr.bf16.mxu0 %v2107_v36  ;;  %v2547_v51 = vld [vmem:[#allocation7 + $0x190] sm:$0xff]   ;;  %v2551_v55 = vld [vmem:[#allocation7 + $0x198] sm:$0xff]   ;;  %v2552_v56 = vld [vmem:[#allocation7 + $0x160] sm:$0xff]   ;;  %v2884_v17 = vmov 0.0  }
  0xa6   :  { %801 = vmatprep.mubr.bf16.mxu1 %v2109_v39  ;;  %v2553_v57 = vld [vmem:[#allocation7 + $0x1e0] sm:$0xff]   ;;  %v2556_v60 = vld [vmem:[#allocation7 + $0x168] sm:$0xff]   ;;  %v2560_v0 = vld [vmem:[#allocation7 + $0x170] sm:$0xff]  }
  0xa7   :  { %2288 = vmatpush3.bf16.msra.mxu0 %v2522_v18  ;;  %v2554_v58 = vld [vmem:[#allocation7 + $0x120] sm:$0xff]   ;;  %v2557_v61 = vld [vmem:[#allocation7 + $0x1e8] sm:$0xff]   ;;  %v2561_v1 = vld [vmem:[#allocation7 + $0x1f0] sm:$0xff]  }
  0xa8   :  { %2310 = vmatpush3.bf16.msra.mxu1 %v2523_v19  ;;  %2289 = vmatprep.subr.bf16.mxu0 %v2524_v20  ;;  %v2555_v59 = vld [vmem:[#allocation7 + $0x1a0] sm:$0xff]   ;;  %v2558_v62 = vld [vmem:[#allocation7 + $0x128] sm:$0xff]   ;;  %v2562_v2 = vld [vmem:[#allocation7 + $0x130] sm:$0xff]  }
  0xa9   :  { %2311 = vmatprep.subr.bf16.mxu1 %v2525_v21  ;;  %v2559_v63 = vld [vmem:[#allocation7 + $0x1a8] sm:$0xff]   ;;  %v2563_v3 = vld [vmem:[#allocation7 + $0x1b0] sm:$0xff]   ;;  %v2564_v4 = vld [vmem:[#allocation7 + $0x178] sm:$0xff]  }
  0xaa   :  { %v2565_v5 = vld [vmem:[#allocation7 + $0x1f8] sm:$0xff]   ;;  %v163_v8 = vld [vmem:[#allocation2 + $0x10] sm:$0xff]  ;;  %v164_v12 = vld [vmem:[#allocation2 + $0x18] sm:$0xff] }
  0xab   :  { %2290 = vmatpush3.bf16.msra.mxu0 %v2526_v22  ;;  %v2566_v6 = vld [vmem:[#allocation7 + $0x138] sm:$0xff]   ;;  %v167_v9 = vld [vmem:[#allocation2 + $0x30] sm:$0xff]  ;;  %v168_v13 = vld [vmem:[#allocation2 + $0x38] sm:$0xff] }
  0xac   :  { %2312 = vmatpush3.bf16.msra.mxu1 %v2527_v23  ;;  %2291 = vmatprep.subr.bf16.mxu0 %v2528_v24  ;;  %v2567_v7 = vld [vmem:[#allocation7 + $0x1b8] sm:$0xff]   ;;  %v2110_v10 = vcombine.low %v163_v8, %v167_v9  ;;  %v2111_v11 = vcombine.high %v163_v8, %v167_v9  ;;  %v2112_v14 = vcombine.low %v164_v12, %v168_v13  ;;  %v2568_v16 = vld [vmem:[#allocation8] sm:$0xff]   ;;  %v2569_v18 = vld [vmem:[#allocation8 + $0x8] sm:$0xff]  }
  0xad   :  { %2313 = vmatprep.subr.bf16.mxu1 %v2529_v25  ;;  %v2113_v15 = vcombine.high %v164_v12, %v168_v13  ;;  %v2570_v19 = vld [vmem:[#allocation8 + $0x10] sm:$0xff]   ;;  %v2571_v20 = vld [vmem:[#allocation8 + $0x18] sm:$0xff]   ;;  %v2572_v21 = vld [vmem:[#allocation8 + $0x20] sm:$0xff]  }
  0xae   :  { %v2573_v22 = vld [vmem:[#allocation8 + $0x28] sm:$0xff]   ;;  %v2574_v23 = vld [vmem:[#allocation8 + $0x30] sm:$0xff]   ;;  %v2575_v24 = vld [vmem:[#allocation8 + $0x38] sm:$0xff]  }
  0xaf   :  { %2292 = vmatpush3.bf16.msra.mxu0 %v2530_v26  ;;  %v2576_v25 = vld [vmem:[#allocation10] sm:$0xff]   ;;  %v2577_v26 = vld [vmem:[#allocation10 + $0x8] sm:$0xff]   ;;  %v2105_v33 = vld [vmem:[%s3246_s3] ss:$0 sm:$0xff] }
  0xb0   :  { %2314 = vmatpush3.bf16.msra.mxu1 %v2531_v27  ;;  %2293 = vmatprep.subr.bf16.mxu0 %v2532_v28  ;;  %v2578_v27 = vld [vmem:[#allocation10 + $0x10] sm:$0xff]   ;;  %v2579_v28 = vld [vmem:[#allocation10 + $0x18] sm:$0xff]  }
  0xb1   :  { %2315 = vmatprep.subr.bf16.mxu1 %v2533_v29  ;;  %v2580_v29 = vld [vmem:[#allocation10 + $0x20] sm:$0xff]  }
  0xb3   :  { %2294 = vmatpush3.bf16.msra.mxu0 %v2534_v30  ;;  %v2581_v30 = vld [vmem:[#allocation10 + $0x28] sm:$0xff]  }
  0xb4   :  { %2316 = vmatpush3.bf16.msra.mxu1 %v2535_v31  ;;  %2323 = vmatprep.subr.bf16.mxu0 %v2536_v40 }
  0xb5   :  { %2345 = vmatprep.subr.bf16.mxu1 %v2537_v41 }
  0xb6   :  { %761 = vmatmul.mubr.bf16.vlgmr.msra.gmra.mrb[0].mxu0 %v2106_v35 }
  0xb7   :  { %802 = vmatmul.mubr.bf16.vlgmr.msra.gmra.mrb[0].mxu1 %v2108_v38  ;;  %2324 = vmatpush3.bf16.msra.mxu0 %v2538_v42 }
  0xb8   :  { %2346 = vmatpush3.bf16.msra.mxu1 %v2539_v43  ;;  %2325 = vmatprep.subr.bf16.mxu0 %v2540_v44 }
  0xb9   :  { %2347 = vmatprep.subr.bf16.mxu1 %v2541_v45  ;;  %842 = vmatprep.mubr.bf16.mxu0 %v2111_v11 }
  0xba   :  { %883 = vmatprep.mubr.bf16.mxu1 %v2113_v15  ;;  %v2584_v15 = vld [vmem:[#allocation11] sm:$0xff]  }
  0xbb   :  { %2326 = vmatpush3.bf16.msra.mxu0 %v2542_v46 }
  0xbc   :  { %2348 = vmatpush3.bf16.msra.mxu1 %v2543_v47  ;;  %2327 = vmatprep.subr.bf16.mxu0 %v2544_v48 }
  0xbd   :  { %2349 = vmatprep.subr.bf16.mxu1 %v2545_v49 }
  0xbf   :  { %2328 = vmatpush3.bf16.msra.mxu0 %v2546_v50 }
  0xc0   :  { %2350 = vmatpush3.bf16.msra.mxu1 %v2547_v51  ;;  %2329 = vmatprep.subr.bf16.mxu0 %v2548_v52 }
  0xc1   :  { %2351 = vmatprep.subr.bf16.mxu1 %v2549_v53 }
  0xc3   :  { %2330 = vmatpush3.bf16.msra.mxu0 %v2550_v54 }
  0xc4   :  { %2352 = vmatpush3.bf16.msra.mxu1 %v2551_v55  ;;  %2331 = vmatprep.subr.bf16.mxu0 %v2552_v56 }
  0xc5   :  { %2353 = vmatprep.subr.bf16.mxu1 %v2553_v57 }
  0xc7   :  { %2332 = vmatpush3.bf16.msra.mxu0 %v2554_v58 }
  0xc8   :  { %2354 = vmatpush3.bf16.msra.mxu1 %v2555_v59  ;;  %2333 = vmatprep.subr.bf16.mxu0 %v2556_v60 }
  0xc9   :  { %2355 = vmatprep.subr.bf16.mxu1 %v2557_v61 }
  0xcb   :  { %2334 = vmatpush3.bf16.msra.mxu0 %v2558_v62 }
  0xcc   :  { %2356 = vmatpush3.bf16.msra.mxu1 %v2559_v63  ;;  %2335 = vmatprep.subr.bf16.mxu0 %v2560_v0 }
  0xcd   :  { %2357 = vmatprep.subr.bf16.mxu1 %v2561_v1 }
  0xcf   :  { %2336 = vmatpush3.bf16.msra.mxu0 %v2562_v2 }
  0xd0   :  { %2358 = vmatpush3.bf16.msra.mxu1 %v2563_v3  ;;  %2337 = vmatprep.subr.bf16.mxu0 %v2564_v4  ;;  %v2582_v3 = vld [vmem:[#allocation10 + $0x30] sm:$0xff]   ;;  %v2583_v4 = vld [vmem:[#allocation10 + $0x38] sm:$0xff]  }
  0xd1   :  { %2359 = vmatprep.subr.bf16.mxu1 %v2565_v5  ;;  %v2178_v5 = vld [vmem:[%s3248_s5] ss:$0 sm:$0xff] }
  0xd3   :  { %2338 = vmatpush3.bf16.msra.mxu0 %v2566_v6 }
  0xd4   :  { %2360 = vmatpush3.bf16.msra.mxu1 %v2567_v7  ;;  %2403 = vmatprep.subr.bf16.mxu0 %v2884_v17 }
  0xd5   :  { %2423 = vmatprep.subr.bf16.mxu1 %v2884_v17 }
  0xd6   :  { %843 = vmatmul.mubr.bf16.vlgmr.msra.gmra.mrb[4].mxu0 %v2110_v10 }
  0xd7   :  { %884 = vmatmul.mubr.bf16.vlgmr.msra.gmra.mrb[4].mxu1 %v2112_v14  ;;  %2404 = vmatpush3.bf16.msra.mxu0 %v2568_v16  ;;  %v2585_v16 = vld [vmem:[#allocation11 + $0x8] sm:$0xff]  }
  0xd8   :  { %2405 = vmatprep.subr.bf16.mxu0 %v2884_v17  ;;  %2419 = vmatprep.mubr.msk.bf16.mxu0 %vm2885_vm0, %v2884_v17 }
  0xd9   :  { %2439 = vmatprep.mubr.msk.bf16.mxu1 %vm2885_vm0, %v2884_v17  ;;  %2424 = vmatpush3.bf16.msra.mxu1 %v2576_v25 }
  0xda   :  { %2425 = vmatprep.subr.bf16.mxu1 %v2884_v17 }
  0xdb   :  { %2406 = vmatpush3.bf16.msra.mxu0 %v2569_v18  ;;  %v2586_v18 = vld [vmem:[#allocation11 + $0x10] sm:$0xff]  }
  0xdc   :  { %2407 = vmatprep.subr.bf16.mxu0 %v2884_v17 }
  0xdd   :  { %2426 = vmatpush3.bf16.msra.mxu1 %v2577_v26  ;;  %v2588_v26 = vld [vmem:[#allocation11 + $0x20] sm:$0xff]  }
  0xde   :  { %2427 = vmatprep.subr.bf16.mxu1 %v2884_v17 }
  0xdf   :  { %2408 = vmatpush3.bf16.msra.mxu0 %v2570_v19  ;;  %v2187_v19 = vld [vmem:[%s3250_s7] ss:$0 sm:$0xff] }
  0xe0   :  { %2409 = vmatprep.subr.bf16.mxu0 %v2884_v17 }
  0xe1   :  { %2428 = vmatpush3.bf16.msra.mxu1 %v2578_v27 }
  0xe2   :  { %2429 = vmatprep.subr.bf16.mxu1 %v2884_v17 }
  0xe3   :  { %2410 = vmatpush3.bf16.msra.mxu0 %v2571_v20  ;;  %v2587_v20 = vld [vmem:[#allocation11 + $0x18] sm:$0xff]  }
  0xe4   :  { %2411 = vmatprep.subr.bf16.mxu0 %v2884_v17 }
  0xe5   :  { %2430 = vmatpush3.bf16.msra.mxu1 %v2579_v28  ;;  %v2589_v28 = vld [vmem:[#allocation11 + $0x28] sm:$0xff]  }
  0xe6   :  { %2431 = vmatprep.subr.bf16.mxu1 %v2884_v17 }
  0xe7   :  { %2412 = vmatpush3.bf16.msra.mxu0 %v2572_v21 }
  0xe8   :  { %2413 = vmatprep.subr.bf16.mxu0 %v2884_v17 }
  0xe9   :  { %2432 = vmatpush3.bf16.msra.mxu1 %v2580_v29  ;;  %v2590_v29 = vld [vmem:[#allocation11 + $0x30] sm:$0xff]  }
  0xea   :  { %2433 = vmatprep.subr.bf16.mxu1 %v2884_v17 }
  0xeb   :  { %2414 = vmatpush3.bf16.msra.mxu0 %v2573_v22 }
  0xec   :  { %2415 = vmatprep.subr.bf16.mxu0 %v2884_v17 }
  0xed   :  { %2434 = vmatpush3.bf16.msra.mxu1 %v2581_v30  ;;  %v2591_v30 = vld [vmem:[#allocation11 + $0x38] sm:$0xff]  }
  0xee   :  { %2435 = vmatprep.subr.bf16.mxu1 %v2884_v17 }
  0xef   :  { %2416 = vmatpush3.bf16.msra.mxu0 %v2574_v23 }
  0xf0   :  { %2417 = vmatprep.subr.bf16.mxu0 %v2884_v17 }
  0xf1   :  { %2436 = vmatpush3.bf16.msra.mxu1 %v2582_v3  ;;  %v1394_v3 = vld [vmem:[#allocation14 + $0x20] sm:$0xff] }
  0xf2   :  { %2437 = vmatprep.subr.bf16.mxu1 %v2884_v17 }
  0xf3   :  { %2418 = vmatpush3.bf16.msra.mxu0 %v2575_v24 }
  0xf4   :  { %2443 = vmatprep.subr.bf16.mxu0 %v2884_v17 }
  0xf5   :  { %2438 = vmatpush3.bf16.msra.mxu1 %v2583_v4  ;;  %v1391_v4 = vld [vmem:[#allocation14 + $0x8] sm:$0xff] }
  0xf6   :  { %2463 = vmatprep.subr.bf16.mxu1 %v2884_v17 }
 0x189   :  { %v2295_v31 = vpop.f32.mrb[0].mxu0 }
 0x18a   :  { %v2317_v32 = vpop.f32.mrb[0].mxu1  ;;  %v2296_v34 = vpop.f32.mrb[1].mxu0 }
 0x18b   :  { %v2297_v35 = vadd.f32 %v2296_v34, %v2295_v31  ;;  %v2318_v36 = vpop.f32.mrb[1].mxu1  ;;  %v2298_v37 = vpop.f32.mrb[2].mxu0  ;;  %v2592_v31 = vld [vmem:[#allocation13] sm:$0xff]   ;;  %v2595_v34 = vld [vmem:[#allocation13 + $0x18] sm:$0xff]  }
 0x18c   :  { %v2319_v38 = vadd.f32 %v2318_v36, %v2317_v32  ;;  %v2320_v39 = vpop.f32.mrb[2].mxu1  ;;  %v2299_v40 = vpop.f32.mrb[3].mxu0  ;;  %v2593_v32 = vld [vmem:[#allocation13 + $0x8] sm:$0xff]  }
 0x18d   :  { %v763_v41 = vadd.f32 %v2297_v35, %v2105_v33  ;;  %v2300_v42 = vadd.f32 %v2299_v40, %v2298_v37  ;;  %v2321_v43 = vpop.f32.mrb[3].mxu1  ;;  %v2596_v35 = vld [vmem:[#allocation13 + $0x20] sm:$0xff]   ;;  %v2597_v36 = vld [vmem:[#allocation13 + $0x28] sm:$0xff]   ;;  %v1122_v37 = vlaneseq }
 0x18e   :  { %v2322_v44 = vadd.f32 %v2321_v43, %v2320_v39  ;;  %v1403_v39 = vld [vmem:[#allocation14 + $0x68] sm:$0xff] }
 0x18f   :  { %v804_v45 = vadd.f32 %v2319_v38, %v763_v41  ;;  %v766_v46 = vadd.f32 %v2300_v42, %v2105_v33  ;;  %v2594_v33 = vld [vmem:[#allocation13 + $0x10] sm:$0xff]   ;;  %v1123_v38 = vand.u32 127, %v1122_v37 }
 0x191   :  { %v807_v47 = vadd.f32 %v2322_v44, %v766_v46  ;;  %vm1124_vm1 = vcmp.ge.s32.totalorder %v1123_v38, 32  ;;  %vm1125_vm2 = vcmp.lt.s32.totalorder %v1123_v38, 48  ;;  %vm1154_vm8 = vcmp.lt.s32.totalorder %v1123_v38, 32 }
 0x192   :  { %vm3160_vm3 = vmand %vm1124_vm1, %vm1125_vm2 }
 0x1a9   :  { %v2339_v48 = vpop.f32.mrb[4].mxu0 }
 0x1aa   :  { %v2361_v49 = vpop.f32.mrb[4].mxu1  ;;  %v2340_v50 = vpop.f32.mrb[5].mxu0 }
 0x1ab   :  { %v2341_v51 = vadd.f32 %v2340_v50, %v2339_v48  ;;  %v2362_v52 = vpop.f32.mrb[5].mxu1  ;;  %v2342_v53 = vpop.f32.mrb[6].mxu0  ;;  %v2196_v48 = vadd.s32 4294967264, %v1123_v38  ;;  %v1399_v38 = vld [vmem:[#allocation14 + $0x48] sm:$0xff] }
 0x1ac   :  { %v2363_v54 = vadd.f32 %v2362_v52, %v2361_v49  ;;  %v2364_v55 = vpop.f32.mrb[6].mxu1  ;;  %v2343_v56 = vpop.f32.mrb[7].mxu0  ;;  %v1140_v49 = vld [vmem:[#allocation5] sm:$0xff]  ;;  %v1141_v52 = vld [vmem:[#allocation5 + $0x8] sm:$0xff] }
 0x1ad   :  { %v845_v57 = vadd.f32 %v2341_v51, %v804_v45  ;;  %v2344_v58 = vadd.f32 %v2343_v56, %v2342_v53  ;;  %v2365_v59 = vpop.f32.mrb[7].mxu1  ;;  %vm1148_vm4 = vcmp.gt.s32.totalorder %v2196_v48, 2  ;;  %vm1146_vm5 = vcmp.lt.s32.totalorder %v2196_v48, 2  ;;  %v1415_v48 = vld [vmem:[#allocation14 + $0xc8] sm:$0xff] }
 0x1ae   :  { %v2366_v60 = vadd.f32 %v2365_v59, %v2364_v55  ;;  %vm1149_vm6 = vmand %vm3160_vm3, %vm1148_vm4 }
 0x1af   :  { %v886_v61 = vadd.f32 %v2363_v54, %v845_v57  ;;  %v848_v62 = vadd.f32 %v2344_v58, %v807_v47  ;;  %vm1147_vm7 = vmand %vm3160_vm3, %vm1146_vm5 }
 0x1b1   :  { %v889_v63 = vadd.f32 %v2366_v60, %v848_v62  ;;  %v892_v0 = vmax.f32 %v886_v61, 0.0 }
 0x1b3   :  { %v893_v1 = vmax.f32 %v889_v63, 0.0 }
 0x1b5   :  { %v894_v2 = vpack.c.bf16 %v893_v1, %v892_v0  ;;  %v2598_v0 = vld [vmem:[#allocation13 + $0x30] sm:$0xff]   ;;  %v2599_v1 = vld [vmem:[#allocation13 + $0x38] sm:$0xff]  }
 0x1b7   :  { %2420 = vmatmul.mubr.bf16.vlgmr.msra.gmra.mrb[8].mxu0 %v894_v2  ;;  %v1390_v2 = vld [vmem:[#allocation14] sm:$0xff] }
 0x1b8   :  { %2459 = vmatprep.mubr.msk.bf16.mxu0 %vm2885_vm0, %v2884_v17  ;;  %2444 = vmatpush3.bf16.msra.mxu0 %v2584_v15 }
 0x1b9   :  { %2445 = vmatprep.subr.bf16.mxu0 %v2884_v17 }
 0x1bc   :  { %2446 = vmatpush3.bf16.msra.mxu0 %v2585_v16 }
 0x1bd   :  { %2447 = vmatprep.subr.bf16.mxu0 %v2884_v17 }
 0x1c0   :  { %2448 = vmatpush3.bf16.msra.mxu0 %v2586_v18  ;;  %v1414_v18 = vld [vmem:[#allocation14 + $0xc0] sm:$0xff] }
 0x1c1   :  { %2449 = vmatprep.subr.bf16.mxu0 %v2884_v17 }
 0x1c4   :  { %2450 = vmatpush3.bf16.msra.mxu0 %v2587_v20 }
 0x1c5   :  { %2451 = vmatprep.subr.bf16.mxu0 %v2884_v17 }
 0x1c8   :  { %2452 = vmatpush3.bf16.msra.mxu0 %v2588_v26  ;;  %v1430_v26 = vld [vmem:[#allocation14 + $0x140] sm:$0xff] }
 0x1c9   :  { %2453 = vmatprep.subr.bf16.mxu0 %v2884_v17 }
 0x1cc   :  { %2454 = vmatpush3.bf16.msra.mxu0 %v2589_v28 }
 0x1cd   :  { %2455 = vmatprep.subr.bf16.mxu0 %v2884_v17 }
 0x1d0   :  { %2456 = vmatpush3.bf16.msra.mxu0 %v2590_v29 }
 0x1d1   :  { %2457 = vmatprep.subr.bf16.mxu0 %v2884_v17 }
 0x1d4   :  { %2458 = vmatpush3.bf16.msra.mxu0 %v2591_v30  ;;  %v2197_v30 = vld [vmem:[%s3252_s9] ss:$0 sm:$0xff] }
 0x28a   :  { %v1000_v6 = vpop.f32.mrb[8].mxu0 }
 0x28b   :  { %v1001_v7 = vadd.f32 %v2178_v5, %v1000_v6  ;;  %v2421_v8 = vpop.f32.mrb[9].mxu0  ;;  %v2216_v6 = vcombine.high %v1390_v2, %v1394_v3 }
 0x28c   :  { %v1003_v9 = vpop.f32.mrb[10].mxu0  ;;  %v1398_v8 = vld [vmem:[#allocation14 + $0x40] sm:$0xff] }
 0x28d   :  { %v1004_v10 = vadd.f32 %v2178_v5, %v1003_v9  ;;  %v2422_v11 = vpop.f32.mrb[11].mxu0  ;;  %v1007_v12 = vmax.f32 %v1001_v7, 0.0  ;;  %v2215_v5 = vcombine.low %v1390_v2, %v1394_v3  ;;  %v1395_v7 = vld [vmem:[#allocation14 + $0x28] sm:$0xff]  ;;  %v1402_v9 = vld [vmem:[#allocation14 + $0x60] sm:$0xff]  ;;  %1816 = vmatprep.subr.bf16.mxu0 %v2216_v6 }
 0x28e   :  { %v2218_v11 = vcombine.high %v1391_v4, %v1395_v7  ;;  %v1450_v6 = vld [vmem:[#allocation14 + $0x1e0] sm:$0xff] }
 0x28f   :  { %v1008_v13 = vmax.f32 %v1004_v10, 0.0  ;;  %v2217_v10 = vcombine.low %v1391_v4, %v1395_v7  ;;  %v1447_v7 = vld [vmem:[#allocation14 + $0x1c8] sm:$0xff] }
 0x291   :  { %v1009_v14 = vpack.c.bf16 %v1008_v13, %v1007_v12  ;;  %v2224_v12 = vcombine.high %v1398_v8, %v1402_v9  ;;  %v2223_v13 = vcombine.low %v1398_v8, %v1402_v9  ;;  %v1451_v9 = vld [vmem:[#allocation14 + $0x1e8] sm:$0xff] }
 0x293   :  { %2440 = vmatmul.mubr.bf16.vlgmr.msra.gmra.mrb[8].mxu1 %v1009_v14  ;;  %v1406_v14 = vld [vmem:[#allocation14 + $0x80] sm:$0xff] }
 0x294   :  { %2479 = vmatprep.mubr.msk.bf16.mxu1 %vm2885_vm0, %v2884_v17  ;;  %2464 = vmatpush3.bf16.msra.mxu1 %v2592_v31 }
 0x295   :  { %2465 = vmatprep.subr.bf16.mxu1 %v2884_v17 }
 0x298   :  { %2466 = vmatpush3.bf16.msra.mxu1 %v2593_v32 }
 0x299   :  { %2467 = vmatprep.subr.bf16.mxu1 %v2884_v17 }
 0x29c   :  { %2468 = vmatpush3.bf16.msra.mxu1 %v2594_v33 }
 0x29d   :  { %2469 = vmatprep.subr.bf16.mxu1 %v2884_v17 }
 0x2a0   :  { %2470 = vmatpush3.bf16.msra.mxu1 %v2595_v34 }
 0x2a1   :  { %2471 = vmatprep.subr.bf16.mxu1 %v2884_v17 }
 0x2a4   :  { %2472 = vmatpush3.bf16.msra.mxu1 %v2596_v35 }
 0x2a5   :  { %2473 = vmatprep.subr.bf16.mxu1 %v2884_v17 }
 0x2a8   :  { %2474 = vmatpush3.bf16.msra.mxu1 %v2597_v36 }
 0x2a9   :  { %2475 = vmatprep.subr.bf16.mxu1 %v2884_v17 }
 0x2ac   :  { %2476 = vmatpush3.bf16.msra.mxu1 %v2598_v0 }
 0x2ad   :  { %2477 = vmatprep.subr.bf16.mxu1 %v2884_v17  ;;  %v1410_v17 = vld [vmem:[#allocation14 + $0xa0] sm:$0xff] }
 0x2ae   :  { %v2232_v15 = vcombine.high %v1406_v14, %v1410_v17  ;;  %v2231_v16 = vcombine.low %v1406_v14, %v1410_v17  ;;  %v1396_v14 = vld [vmem:[#allocation14 + $0x30] sm:$0xff]  ;;  %v1393_v17 = vld [vmem:[#allocation14 + $0x18] sm:$0xff] }
 0x2b0   :  { %2478 = vmatpush3.bf16.msra.mxu1 %v2599_v1  ;;  %v1443_v1 = vld [vmem:[#allocation14 + $0x1a8] sm:$0xff] }
 0x2b1   :  { %1859 = vmatprep.subr.bf16.mxu1 %v2218_v11  ;;  %v2273_v11 = vcombine.low %v1447_v7, %v1451_v9 }
 0x366   :  { %v1115_v21 = vpop.f32.mrb[8].mxu1 }
 0x367   :  { %v3143_v22 = vadd.f32 %v2187_v19, %v1115_v21  ;;  %v2441_v23 = vpop.f32.mrb[9].mxu1 }
 0x368   :  { %v1118_v24 = vpop.f32.mrb[10].mxu1  ;;  %v1426_v23 = vld [vmem:[#allocation14 + $0x120] sm:$0xff] }
 0x369   :  { %1128 = vrot.lane.b32.xlu0 %v3143_v22, %s2886_s16  ;;  %v2442_v25 = vpop.f32.mrb[11].mxu1  ;;  %v3147_v27 = vadd.f32 %v2187_v19, %v1118_v24  ;;  %v1418_v19 = vld [vmem:[#allocation14 + $0xe0] sm:$0xff] }
 0x36a   :  { %v2240_v20 = vcombine.high %v1414_v18, %v1418_v19  ;;  %v2239_v21 = vcombine.low %v1414_v18, %v1418_v19  ;;  %v1397_v18 = vld [vmem:[#allocation14 + $0x38] sm:$0xff]  ;;  %v2887_v19 = vmov 0  }
 0x36d   :  { %1130 = vrot.lane.b32.xlu0 %v3147_v27, %s2886_s16 }
 0x3db   :  { %v1129_v40 = vpop.permute.xlu0 %1128 }
 0x3dc   :  { %v1132_v41 = vsel %vm3160_vm3, %v1129_v40, 0.0 }
 0x3dd   :  { %v1134_v42 = vmul.f32 0.5, %v1132_v41 }
 0x3df   :  { %v1136_v43 = vmul.f32 1.442695, %v1134_v42  ;;  %v1131_v44 = vpop.permute.xlu0 %1130 }
 0x3e0   :  { %v1133_v45 = vsel %vm3160_vm3, %v1131_v44, 0.0  ;;  %v1407_v44 = vld [vmem:[#allocation14 + $0x88] sm:$0xff] }
 0x3e1   :  { %2600 = vpow2.f32 %v1136_v43  ;;  %v1135_v46 = vmul.f32 0.5, %v1133_v45  ;;  %v2226_v43 = vcombine.high %v1399_v38, %v1403_v39  ;;  %v1411_v45 = vld [vmem:[#allocation14 + $0xa8] sm:$0xff] }
 0x3e3   :  { %v1138_v47 = vmul.f32 1.442695, %v1135_v46  ;;  %v2225_v46 = vcombine.low %v1399_v38, %v1403_v39  ;;  %v1408_v39 = vld [vmem:[#allocation14 + $0x90] sm:$0xff] }
 0x3e5   :  { %2602 = vpow2.f32 %v1138_v47  ;;  %v2234_v47 = vcombine.high %v1407_v44, %v1411_v45 }
 0x3eb   :  { %v2601_v50 = vpop.eup %2600 }
 0x3ec   :  { %v1142_v51 = vmul.f32 %v2601_v50, %v1140_v49  ;;  %v1419_v49 = vld [vmem:[#allocation14 + $0xe8] sm:$0xff]  ;;  %v2233_v50 = vcombine.low %v1407_v44, %v1411_v45 }
 0x3ee   :  { %v1144_v53 = vadd.f32 %v1142_v51, %v3143_v22  ;;  %v2242_v51 = vcombine.high %v1415_v48, %v1419_v49 }
 0x3ef   :  { %v2603_v54 = vpop.eup %2602 }
 0x3f0   :  { %v1150_v55 = vsel %vm1149_vm6, %v1144_v53, 0.0  ;;  %v1143_v56 = vmul.f32 %v2603_v54, %v1141_v52  ;;  %v1423_v52 = vld [vmem:[#allocation14 + $0x108] sm:$0xff]  ;;  %v2241_v54 = vcombine.low %v1415_v48, %v1419_v49  ;;  %v1420_v48 = vld [vmem:[#allocation14 + $0xf0] sm:$0xff]  ;;  %v1417_v49 = vld [vmem:[#allocation14 + $0xd8] sm:$0xff] }
 0x3f1   :  { %v1152_v57 = vsel %vm1147_vm7, %v3143_v22, %v1150_v55  ;;  %v1427_v53 = vld [vmem:[#allocation14 + $0x128] sm:$0xff] }
 0x3f2   :  { %v1145_v58 = vadd.f32 %v1143_v56, %v3147_v27  ;;  %v1155_v59 = vsel %vm1154_vm8, %v3143_v22, %v1152_v57  ;;  %v1422_v22 = vld [vmem:[#allocation14 + $0x100] sm:$0xff]  ;;  %v2250_v55 = vcombine.high %v1423_v52, %v1427_v53  ;;  %v1431_v56 = vld [vmem:[#allocation14 + $0x148] sm:$0xff] }
 0x3f3   :  { %1157 = vst [vmem:[#allocation17] sm:$0xff] %v1155_v59  ;;  %v2248_v24 = vcombine.high %v1422_v22, %v1426_v23  ;;  %v2247_v25 = vcombine.low %v1422_v22, %v1426_v23  ;;  %v1435_v57 = vld [vmem:[#allocation14 + $0x168] sm:$0xff]  ;;  %v2206_v22 = vld [vmem:[%s3254_s11] ss:$0 sm:$0xff]  ;;  %s2888_s11 = smov [#allocation17]  }
 0x3f4   :  { %v1151_v60 = vsel %vm1149_vm6, %v1145_v58, 0.0  ;;  %v2249_v58 = vcombine.low %v1423_v52, %v1427_v53  ;;  %s2085_s20 = sshll.u32 %s2888_s11, 4  ;;  %s2086_s20 = int_to_ptr.vmem [resolvable:$true] %s2085_s20 }
 0x3f5   :  { %v1153_v61 = vsel %vm1147_vm7, %v3147_v27, %v1151_v60  ;;  %v2257_v60 = vcombine.low %v1431_v56, %v1435_v57  ;;  %s2812_s22 = scalar_lea.vmem %s2086_s20, 256  ;;  %p2817_p9 = scmp.lt.s32.totalorder %s2086_s20, %s2086_s20 }
 0x3f6   :  { %v1156_v62 = vsel %vm1154_vm8, %v3147_v27, %v1153_v61  ;;  %v1434_v27 = vld [vmem:[#allocation14 + $0x160] sm:$0xff]  ;;  %p2813_p8 = scmp.ne.s32.totalorder %s2086_s20, %s2812_s22  ;;  %p2818_p10 = scmp.lt.s32.totalorder %s2812_s22, %s2812_s22 }
 0x3f7   :  { %v1159_v63 = vpack.c.bf16 %v1156_v62, %v1155_v59  ;;  %1158 = vst [vmem:[#allocation17 + $0x8] sm:$0xff] %v1156_v62  ;;  %v2256_v28 = vcombine.high %v1430_v26, %v1434_v27  ;;  %v2255_v29 = vcombine.low %v1430_v26, %v1434_v27  ;;  %v2258_v59 = vcombine.high %v1431_v56, %v1435_v57  ;;  %v1438_v61 = vld [vmem:[#allocation14 + $0x180] sm:$0xff]  ;;  %v1428_v56 = vld [vmem:[#allocation14 + $0x130] sm:$0xff]  ;;  %v1425_v57 = vld [vmem:[#allocation14 + $0x118] sm:$0xff] }
 0x3f8   :  { %v1442_v62 = vld [vmem:[#allocation14 + $0x1a0] sm:$0xff]  ;;  %p2819_p11 = por %p2818_p10, %p2817_p9 }
 0x3f9   :  { %2460 = vmatmul.mubr.bf16.vlgmr.msra.gmra.mrb[12].mxu0 %v1159_v63  ;;  %v1439_v63 = vld [vmem:[#allocation14 + $0x188] sm:$0xff]  ;;  %v2264_v0 = vcombine.high %v1438_v61, %v1442_v62  ;;  %v2263_v2 = vcombine.low %v1438_v61, %v1442_v62 }
 0x3fa   :  { %1817 = vmatpush1.bf16.msra.mxu0 %v2215_v5  ;;  %v2265_v3 = vcombine.low %v1439_v63, %v1443_v1  ;;  %v2266_v4 = vcombine.high %v1439_v63, %v1443_v1  ;;  %v1446_v5 = vld [vmem:[#allocation14 + $0x1c0] sm:$0xff]  ;;  %1848 = vmatprep.mubr.bf16.mxu0 %v2887_v19  ;;  %v1432_v63 = vld [vmem:[#allocation14 + $0x150] sm:$0xff]  ;;  %v1433_v1 = vld [vmem:[#allocation14 + $0x158] sm:$0xff]  ;;  %p2820_p12 = pnand %p2819_p11, %p2813_p8 }
 0x3fb   :  { %1818 = vmatprep.subr.bf16.mxu0 %v2224_v12  ;;  %v2272_v8 = vcombine.high %v1446_v5, %v1450_v6  ;;  %v2274_v12 = vcombine.high %v1447_v7, %v1451_v9  ;;  %v1440_v7 = vld [vmem:[#allocation14 + $0x190] sm:$0xff]  ;;  %v1441_v9 = vld [vmem:[#allocation14 + $0x198] sm:$0xff] }
 0x3fe   :  { %1819 = vmatpush1.bf16.msra.mxu0 %v2223_v13  ;;  %v1392_v13 = vld [vmem:[#allocation14 + $0x10] sm:$0xff] }
 0x3ff   :  { %1820 = vmatprep.subr.bf16.mxu0 %v2232_v15  ;;  %v2219_v15 = vcombine.low %v1392_v13, %v1396_v14 }
 0x402   :  { %1821 = vmatpush1.bf16.msra.mxu0 %v2231_v16  ;;  %v2220_v16 = vcombine.high %v1392_v13, %v1396_v14 }
 0x403   :  { %1822 = vmatprep.subr.bf16.mxu0 %v2240_v20  ;;  %v2221_v20 = vcombine.low %v1393_v17, %v1397_v18 }
 0x406   :  { %1823 = vmatpush1.bf16.msra.mxu0 %v2239_v21  ;;  %v2222_v21 = vcombine.high %v1393_v17, %v1397_v18  ;;  %v1448_v17 = vld [vmem:[#allocation14 + $0x1d0] sm:$0xff]  ;;  %v1453_v18 = vld [vmem:[#allocation14 + $0x1f8] sm:$0xff] }
 0x407   :  { %1824 = vmatprep.subr.bf16.mxu0 %v2248_v24 }
 0x40a   :  { %1825 = vmatpush1.bf16.msra.mxu0 %v2247_v25 }
 0x40b   :  { %1826 = vmatprep.subr.bf16.mxu0 %v2256_v28 }
 0x40e   :  { %1827 = vmatpush1.bf16.msra.mxu0 %v2255_v29  ;;  %v1400_v29 = vld [vmem:[#allocation14 + $0x50] sm:$0xff] }
 0x40f   :  { %1828 = vmatprep.subr.bf16.mxu0 %v2264_v0  ;;  %v1436_v0 = vld [vmem:[#allocation14 + $0x170] sm:$0xff] }
 0x412   :  { %1829 = vmatpush1.bf16.msra.mxu0 %v2263_v2  ;;  %v1437_v2 = vld [vmem:[#allocation14 + $0x178] sm:$0xff] }
 0x413   :  { %1830 = vmatprep.subr.bf16.mxu0 %v2272_v8  ;;  %v1444_v8 = vld [vmem:[#allocation14 + $0x1b0] sm:$0xff] }
 0x414   :  { %v2268_v13 = vcombine.high %v1440_v7, %v1444_v8 }
 0x4cc   :  { %v1265_v31 = vpop.f32.mrb[12].mxu0 }
 0x4cd   :  { %v1266_v32 = vadd.f32 %v2197_v30, %v1265_v31  ;;  %v2461_v33 = vpop.f32.mrb[13].mxu0  ;;  %v1401_v31 = vld [vmem:[#allocation14 + $0x58] sm:$0xff] }
 0x4ce   :  { %v1268_v34 = vpop.f32.mrb[14].mxu0 }
 0x4cf   :  { %v1269_v35 = vadd.f32 %v2197_v30, %v1268_v34  ;;  %v2462_v36 = vpop.f32.mrb[15].mxu0  ;;  %v1272_v40 = vmax.f32 %v1266_v32, 0.0  ;;  %v1404_v30 = vld [vmem:[#allocation14 + $0x70] sm:$0xff]  ;;  %v1405_v32 = vld [vmem:[#allocation14 + $0x78] sm:$0xff] }
 0x4d0   :  { %v2228_v36 = vcombine.high %v1400_v29, %v1404_v30  ;;  %v2230_v38 = vcombine.high %v1401_v31, %v1405_v32  ;;  %v2229_v44 = vcombine.low %v1401_v31, %v1405_v32 }
 0x4d1   :  { %v1273_v41 = vmax.f32 %v1269_v35, 0.0 }
 0x4d3   :  { %v1274_v42 = vpack.c.bf16 %v1273_v41, %v1272_v40  ;;  %v1412_v40 = vld [vmem:[#allocation14 + $0xb0] sm:$0xff]  ;;  %v1409_v41 = vld [vmem:[#allocation14 + $0x98] sm:$0xff] }
 0x4d4   :  { %v2236_v45 = vcombine.high %v1408_v39, %v1412_v40 }
 0x4d5   :  { %2480 = vmatmul.mubr.bf16.vlgmr.msra.gmra.mrb[12].mxu1 %v1274_v42  ;;  %v1413_v42 = vld [vmem:[#allocation14 + $0xb8] sm:$0xff] }
 0x4d6   :  { %1860 = vmatpush1.bf16.msra.mxu1 %v2217_v10  ;;  %v2271_v10 = vcombine.low %v1446_v5, %v1450_v6  ;;  %1891 = vmatprep.mubr.bf16.mxu1 %v2887_v19  ;;  %v2237_v52 = vcombine.low %v1409_v41, %v1413_v42  ;;  %v2260_v5 = vcombine.high %v1432_v63, %v1436_v0 }
 0x4d7   :  { %1861 = vmatprep.subr.bf16.mxu1 %v2226_v43  ;;  %v2227_v43 = vcombine.low %v1400_v29, %v1404_v30  ;;  %v2262_v6 = vcombine.high %v1433_v1, %v1437_v2 }
 0x4d8   :  { %1831 = vmatpush1.bf16.msra.mxu0 %v2271_v10  ;;  %v1445_v10 = vld [vmem:[#allocation14 + $0x1b8] sm:$0xff] }
 0x4d9   :  { %1902 = vmatprep.subr.bf16.mxu0 %v2220_v16  ;;  %v2270_v14 = vcombine.high %v1441_v9, %v1445_v10  ;;  %v1449_v16 = vld [vmem:[#allocation14 + $0x1d8] sm:$0xff] }
 0x4da   :  { %1862 = vmatpush1.bf16.msra.mxu1 %v2225_v46  ;;  %v2238_v46 = vcombine.high %v1409_v41, %v1413_v42 }
 0x4db   :  { %1863 = vmatprep.subr.bf16.mxu1 %v2234_v47  ;;  %v1416_v47 = vld [vmem:[#allocation14 + $0xd0] sm:$0xff] }
 0x4dc   :  { %v2244_v53 = vcombine.high %v1416_v47, %v1420_v48 }
 0x4de   :  { %1864 = vmatpush1.bf16.msra.mxu1 %v2233_v50  ;;  %v1421_v50 = vld [vmem:[#allocation14 + $0xf8] sm:$0xff] }
 0x4df   :  { %1865 = vmatprep.subr.bf16.mxu1 %v2242_v51  ;;  %v2235_v51 = vcombine.low %v1408_v39, %v1412_v40 }
 0x4e2   :  { %1866 = vmatpush1.bf16.msra.mxu1 %v2241_v54  ;;  %v2246_v54 = vcombine.high %v1417_v49, %v1421_v50 }
 0x4e3   :  { %1867 = vmatprep.subr.bf16.mxu1 %v2250_v55  ;;  %v1424_v55 = vld [vmem:[#allocation14 + $0x110] sm:$0xff] }
 0x4e4   :  { %v2252_v61 = vcombine.high %v1424_v55, %v1428_v56 }
 0x4e6   :  { %1868 = vmatpush1.bf16.msra.mxu1 %v2249_v58  ;;  %v1429_v58 = vld [vmem:[#allocation14 + $0x138] sm:$0xff] }
 0x4e7   :  { %1869 = vmatprep.subr.bf16.mxu1 %v2258_v59  ;;  %v2243_v59 = vcombine.low %v1416_v47, %v1420_v48  ;;  %v2254_v62 = vcombine.high %v1425_v57, %v1429_v58 }
 0x4ea   :  { %1870 = vmatpush1.bf16.msra.mxu1 %v2257_v60  ;;  %v2245_v60 = vcombine.low %v1417_v49, %v1421_v50 }
 0x4eb   :  { %1871 = vmatprep.subr.bf16.mxu1 %v2266_v4  ;;  %v2253_v4 = vcombine.low %v1425_v57, %v1429_v58 }
 0x4ee   :  { %1872 = vmatpush1.bf16.msra.mxu1 %v2265_v3  ;;  %v2251_v3 = vcombine.low %v1424_v55, %v1428_v56 }
 0x4ef   :  { %1873 = vmatprep.subr.bf16.mxu1 %v2274_v12  ;;  %v2261_v12 = vcombine.low %v1433_v1, %v1437_v2 }
 0x4f2   :  { %1874 = vmatpush1.bf16.msra.mxu1 %v2273_v11  ;;  %v2259_v11 = vcombine.low %v1432_v63, %v1436_v0 }
 0x4f3   :  { %1945 = vmatprep.subr.bf16.mxu1 %v2222_v21 }
 0x5a8   :  { %v1380_v23 = vpop.f32.mrb[12].mxu1 }
 0x5a9   :  { %v1381_v24 = vadd.f32 %v2206_v22, %v1380_v23  ;;  %v2481_v25 = vpop.f32.mrb[13].mxu1 }
 0x5aa   :  { %v1383_v26 = vpop.f32.mrb[14].mxu1 }
 0x5ab   :  { %v1384_v27 = vadd.f32 %v2206_v22, %v1383_v26  ;;  %v2482_v28 = vpop.f32.mrb[15].mxu1  ;;  %v1387_v33 = vmax.f32 %v1381_v24, 0.0  ;;  %v2278_v22 = vcombine.high %v1449_v16, %v1453_v18  ;;  %v2277_v24 = vcombine.low %v1449_v16, %v1453_v18 }
 0x5ad   :  { %v1388_v34 = vmax.f32 %v1384_v27, 0.0 }
 0x5af   :  { %v3185_v35 = vpack.c.bf16 %v1388_v34, %v1387_v33 }
 0x5b1   :  { %1849 = vmatmul.mubr.bf16.vlgmr.msra.gmra.mrb[16].mxu0 %v3185_v35  ;;  %1892 = vmatmul.mubr.bf16.vlgmr.msra.gmra.mrb[16].mxu1 %v3185_v35 }
 0x5b2   :  { %1903 = vmatpush1.bf16.msra.mxu0 %v2219_v15  ;;  %1946 = vmatpush1.bf16.msra.mxu1 %v2221_v20  ;;  %v1452_v15 = vld [vmem:[#allocation14 + $0x1f0] sm:$0xff]  ;;  %v2269_v20 = vcombine.low %v1441_v9, %v1445_v10 }
 0x5b3   :  { %1904 = vmatprep.subr.bf16.mxu0 %v2228_v36  ;;  %1947 = vmatprep.subr.bf16.mxu1 %v2230_v38  ;;  %v2276_v21 = vcombine.high %v1448_v17, %v1452_v15  ;;  %v2275_v23 = vcombine.low %v1448_v17, %v1452_v15 }
 0x5b4   :  { %1934 = vmatprep.mubr.bf16.mxu0 %v2887_v19  ;;  %1977 = vmatprep.mubr.bf16.mxu1 %v2887_v19  ;;  %v2267_v19 = vcombine.low %v1440_v7, %v1444_v8 }
 0x5b6   :  { %1905 = vmatpush1.bf16.msra.mxu0 %v2227_v43  ;;  %1948 = vmatpush1.bf16.msra.mxu1 %v2229_v44 }
 0x5b7   :  { %1906 = vmatprep.subr.bf16.mxu0 %v2236_v45  ;;  %1949 = vmatprep.subr.bf16.mxu1 %v2238_v46 }
 0x5ba   :  { %1907 = vmatpush1.bf16.msra.mxu0 %v2235_v51  ;;  %1950 = vmatpush1.bf16.msra.mxu1 %v2237_v52 }
 0x5bb   :  { %1908 = vmatprep.subr.bf16.mxu0 %v2244_v53  ;;  %1951 = vmatprep.subr.bf16.mxu1 %v2246_v54 }
 0x5be   :  { %1909 = vmatpush1.bf16.msra.mxu0 %v2243_v59  ;;  %1952 = vmatpush1.bf16.msra.mxu1 %v2245_v60 }
 0x5bf   :  { %1910 = vmatprep.subr.bf16.mxu0 %v2252_v61  ;;  %1953 = vmatprep.subr.bf16.mxu1 %v2254_v62 }
 0x5c2   :  { %1911 = vmatpush1.bf16.msra.mxu0 %v2251_v3  ;;  %1954 = vmatpush1.bf16.msra.mxu1 %v2253_v4 }
 0x5c3   :  { %1912 = vmatprep.subr.bf16.mxu0 %v2260_v5  ;;  %1955 = vmatprep.subr.bf16.mxu1 %v2262_v6 }
 0x5c6   :  { %1913 = vmatpush1.bf16.msra.mxu0 %v2259_v11  ;;  %1956 = vmatpush1.bf16.msra.mxu1 %v2261_v12 }
 0x5c7   :  { %1914 = vmatprep.subr.bf16.mxu0 %v2268_v13  ;;  %1957 = vmatprep.subr.bf16.mxu1 %v2270_v14 }
 0x5ca   :  { %1915 = vmatpush1.bf16.msra.mxu0 %v2267_v19  ;;  %1958 = vmatpush1.bf16.msra.mxu1 %v2269_v20 }
 0x5cb   :  { %1916 = vmatprep.subr.bf16.mxu0 %v2276_v21  ;;  %1959 = vmatprep.subr.bf16.mxu1 %v2278_v22 }
 0x5ce   :  { %1917 = vmatpush1.bf16.msra.mxu0 %v2275_v23  ;;  %1960 = vmatpush1.bf16.msra.mxu1 %v2277_v24 }
 0x5d1   :  { %1935 = vmatmul.mubr.bf16.vlgmr.msra.gmra.mrb[20].mxu0 %v3185_v35  ;;  %1978 = vmatmul.mubr.bf16.vlgmr.msra.gmra.mrb[20].mxu1 %v3185_v35 }
 0x5d2   :  { %2823 = shalt.err (!%p2820_p12)
}
 0x5d3   :  { %s2824_s23 = scalar_lea.hbm %s3258_s15, 256 }
 0x5d4   :  { %p2825_p13 = scmp.ne.s32.totalorder %s3258_s15, %s2824_s23  ;;  %p2828_p0 = scmp.lt.u32.totalorder %s2824_s23, %s3258_s15 }
 0x5d6   :  { %p2830_p1 = pnand %p2828_p0, %p2825_p13 }
 0x5d8   :  { %2833 = shalt.err (!%p2830_p1)
}
 0x5d9   :  { %s3264_s0 = smov 128   ;;  %v3207_v25 = vshrl.u32 %v1122_v37, 7  ;;  %v3214_v28 = vld [vmem:[%s3256_s13] sm:$0xff]  ;;  %s2889_s13 = smov [#allocation16]  }
 0x5da   :  { %2091 = dma.vmem_to_hbm [thread:$0]  %s2086_s20, 256, %s3258_s15, [#allocation18], %s3264_s0, %s3264_s0, %s2872_s29  }
 0x5db   :  { %v1458_v26 = vsub.s32 0, %v3207_v25  ;;  %v1466_v27 = vsub.s32 2, %v3207_v25  ;;  %v1462_v29 = vsub.s32 1, %v3207_v25  ;;  %v1470_v30 = vsub.s32 3, %v3207_v25  ;;  %s2073_s15 = sshll.u32 %s2889_s13, 4  ;;  %s2074_s15 = int_to_ptr.vmem [resolvable:$true] %s2073_s15 }
 0x5dc   :  { %v1474_v19 = vsub.s32 4, %v3207_v25  ;;  %v1482_v20 = vsub.s32 6, %v3207_v25  ;;  %v1478_v21 = vsub.s32 5, %v3207_v25  ;;  %v1486_v22 = vsub.s32 7, %v3207_v25  ;;  %s2834_s29 = scalar_lea.vmem %s2074_s15, 2048  ;;  %p2839_p3 = scmp.lt.s32.totalorder %s2074_s15, %s2074_s15 }
 0x5dd   :  { %v1459_v31 = vrot.slane %v3214_v28, %v1458_v26  ;;  %v1467_v32 = vrot.slane %v3214_v28, %v1466_v27  ;;  %v1463_v37 = vrot.slane %v3214_v28, %v1462_v29  ;;  %v1471_v33 = vrot.slane %v3214_v28, %v1470_v30  ;;  %p2835_p2 = scmp.ne.s32.totalorder %s2074_s15, %s2834_s29  ;;  %p2840_p4 = scmp.lt.s32.totalorder %s2834_s29, %s2834_s29 }
 0x5de   :  { %v1475_v23 = vrot.slane %v3214_v28, %v1474_v19  ;;  %v1483_v24 = vrot.slane %v3214_v28, %v1482_v20  ;;  %v1479_v26 = vrot.slane %v3214_v28, %v1478_v21  ;;  %v1487_v27 = vrot.slane %v3214_v28, %v1486_v22 }
 0x5df   :  { %p2841_p5 = por %p2840_p4, %p2839_p3 }
 0x5e1   :  { %p2842_p6 = pnand %p2841_p5, %p2835_p2 }
 0x684   :  { %v1850_v34 = vpop.f32.mrb[16].mxu0  ;;  %v1893_v35 = vpop.f32.mrb[16].mxu1 }
 0x685   :  { %v1851_v36 = vadd.f32 %v1850_v34, %v1459_v31  ;;  %v1894_v38 = vadd.f32 %v1893_v35, %v1467_v32  ;;  %v1852_v39 = vpop.f32.mrb[17].mxu0  ;;  %v1895_v40 = vpop.f32.mrb[17].mxu1 }
 0x686   :  { %v1853_v41 = vadd.f32 %v1852_v39, %v1463_v37  ;;  %v1896_v42 = vadd.f32 %v1895_v40, %v1471_v33  ;;  %v1854_v43 = vpop.f32.mrb[18].mxu0  ;;  %v1897_v44 = vpop.f32.mrb[18].mxu1 }
 0x687   :  { %v1988_v45 = vmul.f32 0.5, %v1851_v36  ;;  %v1990_v46 = vmul.f32 0.5, %v1894_v38  ;;  %v1855_v47 = vadd.f32 %v1854_v43, %v1459_v31  ;;  %v1898_v48 = vadd.f32 %v1897_v44, %v1467_v32  ;;  %v1856_v49 = vpop.f32.mrb[19].mxu0  ;;  %v1899_v50 = vpop.f32.mrb[19].mxu1 }
 0x688   :  { %v1989_v51 = vmul.f32 0.5, %v1853_v41  ;;  %v1991_v52 = vmul.f32 0.5, %v1896_v42  ;;  %v1857_v53 = vadd.f32 %v1856_v49, %v1463_v37  ;;  %v1900_v54 = vadd.f32 %v1899_v50, %v1471_v33 }
 0x689   :  { %2604 = vtanh.f32 %v1988_v45  ;;  %v1996_v55 = vmul.f32 0.5, %v1855_v47  ;;  %v1998_v56 = vmul.f32 0.5, %v1898_v48 }
 0x68a   :  { %2606 = vtanh.f32 %v1990_v46  ;;  %v1997_v57 = vmul.f32 0.5, %v1857_v53  ;;  %v1999_v58 = vmul.f32 0.5, %v1900_v54 }
 0x68b   :  { %2608 = vtanh.f32 %v1989_v51 }
 0x68c   :  { %2610 = vtanh.f32 %v1991_v52 }
 0x68d   :  { %2612 = vtanh.f32 %v1996_v55 }
 0x68e   :  { %2614 = vtanh.f32 %v1998_v56 }
 0x68f   :  { %2616 = vtanh.f32 %v1997_v57 }
 0x690   :  { %2618 = vtanh.f32 %v1999_v58 }
 0x693   :  { %v2605_v59 = vpop.eup %2604 }
 0x694   :  { %v2607_v60 = vpop.eup %2606  ;;  %v2020_v61 = vmul.f32 0.5, %v2605_v59 }
 0x695   :  { %v2609_v62 = vpop.eup %2608  ;;  %v2022_v63 = vmul.f32 0.5, %v2607_v60 }
 0x696   :  { %v2611_v0 = vpop.eup %2610  ;;  %v2036_v1 = vadd.f32 0.5, %v2020_v61  ;;  %v2021_v2 = vmul.f32 0.5, %v2609_v62 }
 0x697   :  { %v2613_v3 = vpop.eup %2612  ;;  %v2038_v4 = vadd.f32 0.5, %v2022_v63  ;;  %v2023_v5 = vmul.f32 0.5, %v2611_v0 }
 0x698   :  { %v2615_v6 = vpop.eup %2614  ;;  %2052 = vst [vmem:[#allocation16] sm:$0xff] %v2036_v1  ;;  %v2037_v7 = vadd.f32 0.5, %v2021_v2  ;;  %v2028_v8 = vmul.f32 0.5, %v2613_v3 }
 0x699   :  { %v2617_v9 = vpop.eup %2616  ;;  %2054 = vst [vmem:[#allocation16 + $0x10] sm:$0xff] %v2038_v4  ;;  %v2039_v10 = vadd.f32 0.5, %v2023_v5  ;;  %v2030_v11 = vmul.f32 0.5, %v2615_v6 }
 0x69a   :  { %v2619_v12 = vpop.eup %2618  ;;  %2053 = vst [vmem:[#allocation16 + $0x8] sm:$0xff] %v2037_v7  ;;  %v2044_v13 = vadd.f32 0.5, %v2028_v8  ;;  %v2029_v14 = vmul.f32 0.5, %v2617_v9 }
 0x69b   :  { %2055 = vst [vmem:[#allocation16 + $0x18] sm:$0xff] %v2039_v10  ;;  %v2046_v17 = vadd.f32 0.5, %v2030_v11  ;;  %v2031_v15 = vmul.f32 0.5, %v2619_v12 }
 0x69c   :  { %2060 = vst [vmem:[#allocation16 + $0x40] sm:$0xff] %v2044_v13  ;;  %v2045_v16 = vadd.f32 0.5, %v2029_v14 }
 0x69d   :  { %2062 = vst [vmem:[#allocation16 + $0x50] sm:$0xff] %v2046_v17  ;;  %v2047_v18 = vadd.f32 0.5, %v2031_v15 }
 0x69e   :  { %2061 = vst [vmem:[#allocation16 + $0x48] sm:$0xff] %v2045_v16 }
 0x69f   :  { %2063 = vst [vmem:[#allocation16 + $0x58] sm:$0xff] %v2047_v18 }
 0x6a4   :  { %v1936_v29 = vpop.f32.mrb[20].mxu0  ;;  %v1979_v30 = vpop.f32.mrb[20].mxu1 }
 0x6a5   :  { %v1937_v31 = vadd.f32 %v1936_v29, %v1475_v23  ;;  %v1980_v32 = vadd.f32 %v1979_v30, %v1483_v24  ;;  %v1938_v37 = vpop.f32.mrb[21].mxu0  ;;  %v1981_v33 = vpop.f32.mrb[21].mxu1 }
 0x6a6   :  { %v1939_v34 = vadd.f32 %v1938_v37, %v1479_v26  ;;  %v1982_v35 = vadd.f32 %v1981_v33, %v1487_v27  ;;  %v1940_v36 = vpop.f32.mrb[22].mxu0  ;;  %v1983_v38 = vpop.f32.mrb[22].mxu1 }
 0x6a7   :  { %v1992_v25 = vmul.f32 0.5, %v1937_v31  ;;  %v1994_v39 = vmul.f32 0.5, %v1980_v32  ;;  %v1941_v40 = vadd.f32 %v1940_v36, %v1475_v23  ;;  %v1984_v41 = vadd.f32 %v1983_v38, %v1483_v24  ;;  %v1942_v42 = vpop.f32.mrb[23].mxu0  ;;  %v1985_v43 = vpop.f32.mrb[23].mxu1 }
 0x6a8   :  { %v1993_v44 = vmul.f32 0.5, %v1939_v34  ;;  %v1995_v45 = vmul.f32 0.5, %v1982_v35  ;;  %v1943_v46 = vadd.f32 %v1942_v42, %v1479_v26  ;;  %v1986_v28 = vadd.f32 %v1985_v43, %v1487_v27 }
 0x6a9   :  { %2620 = vtanh.f32 %v1992_v25  ;;  %v2000_v47 = vmul.f32 0.5, %v1941_v40  ;;  %v2002_v48 = vmul.f32 0.5, %v1984_v41 }
 0x6aa   :  { %2622 = vtanh.f32 %v1994_v39  ;;  %v2001_v49 = vmul.f32 0.5, %v1943_v46  ;;  %v2003_v50 = vmul.f32 0.5, %v1986_v28 }
 0x6ab   :  { %2624 = vtanh.f32 %v1993_v44 }
 0x6ac   :  { %2626 = vtanh.f32 %v1995_v45 }
 0x6ad   :  { %2628 = vtanh.f32 %v2000_v47 }
 0x6ae   :  { %2630 = vtanh.f32 %v2002_v48 }
 0x6af   :  { %2632 = vtanh.f32 %v2001_v49 }
 0x6b0   :  { %2634 = vtanh.f32 %v2003_v50 }
 0x6b3   :  { %v2621_v51 = vpop.eup %2620 }
 0x6b4   :  { %v2623_v52 = vpop.eup %2622  ;;  %v2024_v53 = vmul.f32 0.5, %v2621_v51 }
 0x6b5   :  { %v2625_v54 = vpop.eup %2624  ;;  %v2026_v55 = vmul.f32 0.5, %v2623_v52 }
 0x6b6   :  { %v2627_v56 = vpop.eup %2626  ;;  %v2040_v57 = vadd.f32 0.5, %v2024_v53  ;;  %v2025_v58 = vmul.f32 0.5, %v2625_v54 }
 0x6b7   :  { %v2629_v59 = vpop.eup %2628  ;;  %v2042_v60 = vadd.f32 0.5, %v2026_v55  ;;  %v2027_v61 = vmul.f32 0.5, %v2627_v56 }
 0x6b8   :  { %v2631_v62 = vpop.eup %2630  ;;  %2056 = vst [vmem:[#allocation16 + $0x20] sm:$0xff] %v2040_v57  ;;  %v2041_v63 = vadd.f32 0.5, %v2025_v58  ;;  %v2032_v0 = vmul.f32 0.5, %v2629_v59 }
 0x6b9   :  { %v2633_v1 = vpop.eup %2632  ;;  %2058 = vst [vmem:[#allocation16 + $0x30] sm:$0xff] %v2042_v60  ;;  %v2043_v2 = vadd.f32 0.5, %v2027_v61  ;;  %v2034_v3 = vmul.f32 0.5, %v2631_v62 }
 0x6ba   :  { %v2635_v4 = vpop.eup %2634  ;;  %2057 = vst [vmem:[#allocation16 + $0x28] sm:$0xff] %v2041_v63  ;;  %v2048_v5 = vadd.f32 0.5, %v2032_v0  ;;  %v2033_v6 = vmul.f32 0.5, %v2633_v1 }
 0x6bb   :  { %2059 = vst [vmem:[#allocation16 + $0x38] sm:$0xff] %v2043_v2  ;;  %v2050_v7 = vadd.f32 0.5, %v2034_v3  ;;  %v2035_v8 = vmul.f32 0.5, %v2635_v4 }
 0x6bc   :  { %2064 = vst [vmem:[#allocation16 + $0x60] sm:$0xff] %v2048_v5  ;;  %v2049_v9 = vadd.f32 0.5, %v2033_v6 }
 0x6bd   :  { %2066 = vst [vmem:[#allocation16 + $0x70] sm:$0xff] %v2050_v7  ;;  %v2051_v10 = vadd.f32 0.5, %v2035_v8 }
 0x6be   :  { %2065 = vst [vmem:[#allocation16 + $0x68] sm:$0xff] %v2049_v9 }
 0x6bf   :  { %2067 = vst [vmem:[#allocation16 + $0x78] sm:$0xff] %v2051_v10 }
 0x6c0   :  { %2845 = shalt.err (!%p2842_p6)
}
 0x6c1   :  { %s3265_s8 = sld [smem:[#allocation26_spill]] }
 0x6c7   :  { %s2846_s3 = scalar_lea.hbm %s3265_s8, 2048 }
 0x6c8   :  { %p2847_p7 = scmp.ne.s32.totalorder %s3265_s8, %s2846_s3  ;;  %p2850_p8 = scmp.lt.u32.totalorder %s2846_s3, %s3265_s8 }
 0x6ca   :  { %p2852_p9 = pnand %p2850_p8, %p2847_p7 }
 0x6cc   :  { %2855 = shalt.err (!%p2852_p9)
}
 0x6cd   :  { %s2890_s7 = smov 1024  }
 0x6ce   :  { %2079 = dma.vmem_to_hbm [thread:$0]  %s2074_s15, 2048, %s3265_s8, [#allocation4], %s2890_s7, %s2890_s7, %s2875_s19  }
 0x6cf   :  { %2866 = dma.done.wait [#allocation4], 2048  }
 0x6d0   :  { %2867 = vsyncadd [#allocation4], 4294965248 }
 0x6d1   :  { %2868 = dma.done.wait [#allocation18], 256  }
 0x6d2   :  { %2869 = vsyncadd [#allocation18], 4294967040 }
 0x6d3   :  { %2098 = vsyncpa [#allocation3], 1 }
 0x6d4   :  { %2099 = vsyncpa [#allocation6], 1 }
 0x6d5   :  { %2100 = vsyncpa [#allocation9], 1 }
 0x6d6   :  { %2101 = vsyncpa [#allocation12], 1 }
 0x6d7   :  { %2102 = vsyncpa [#allocation15], 1 }
 0x6d8   :  { %2103 = vsyncpa [#allocation4], 1 }
 0x6d9   :  { %2104 = vsyncpa [#allocation18], 1 }

</bundles_post_ra>
